<compile_context>
chip_gen: v7x
topology: tpu7x:2x2x1
jax: 0.10.0
libtpu: 0.0.40
codegen_flags: <defaults>
</compile_context>

<pallas_src>
import functools

import jax
import jax.numpy as jnp
from jax.experimental import pallas as pl
from jax.experimental.pallas import tpu as pltpu


# ---------------------------------------------------------------------
# Fused MaskLayer kernel
# ---------------------------------------------------------------------

def _mask_layer_kernel(x_ref, w1_ref, b1_ref, w2_ref, b2_ref, o_ref):
    """o = sigmoid(silu(x @ w1 + b1) @ w2 + b2) * x   (BN pre-folded into w/b)."""
    x = x_ref[...]                                       # (tm, C) f32 tile
    xb = x.astype(jnp.bfloat16)                          # in-VMEM cast for MXU
    h = jnp.dot(xb, w1_ref[...], preferred_element_type=jnp.float32)
    h = h + b1_ref[...]
    h = h * jax.nn.sigmoid(h)                            # SiLU (EUP)
    m = jnp.dot(h.astype(jnp.bfloat16), w2_ref[...],
                preferred_element_type=jnp.float32)
    m = jax.nn.sigmoid(m + b2_ref[...])
    o_ref[...] = (m * x).astype(o_ref.dtype)


def _pick_row_tile(M):
    for cand in (512, 256, 128, 64, 32, 16, 8):
        if M % cand == 0:
            return cand
    return M  # fall back to full extent (always legal)


def mask_layer(params, x_nchw):
    """MaskLayer forward.  x: (B, C, H, W) f32 -> (B, C, H, W) f32."""
    B, C, H, W = x_nchw.shape
    M = B * H * W
    mid = params["w1"].shape[1]
    tm = _pick_row_tile(M)

    # channels-last, rows = B*H*W, lanes = C
    x2d = jnp.transpose(x_nchw, (0, 2, 3, 1)).reshape(M, C)

    out2d = pl.pallas_call(
        _mask_layer_kernel,
        grid=(M // tm,),
        in_specs=[
            pl.BlockSpec((tm, C), lambda i: (i, 0)),     # x tile
            pl.BlockSpec((C, mid), lambda i: (0, 0)),    # folded w1 (bf16)
            pl.BlockSpec((1, mid), lambda i: (0, 0)),    # folded b1
            pl.BlockSpec((mid, C), lambda i: (0, 0)),    # folded w2 (bf16)
            pl.BlockSpec((1, C), lambda i: (0, 0)),      # folded b2
        ],
        out_specs=pl.BlockSpec((tm, C), lambda i: (i, 0)),
        out_shape=jax.ShapeDtypeStruct((M, C), jnp.float32),
        compiler_params=pltpu.CompilerParams(
            dimension_semantics=("parallel",)),
    )(x2d, params["w1"], params["b1"], params["w2"], params["b2"])

    return jnp.transpose(out2d.reshape(B, H, W, C), (0, 3, 1, 2))


# ---------------------------------------------------------------------
# Parameters: raw (PyTorch-style) init + BN folding into conv weights
# ---------------------------------------------------------------------

def init_raw_params(key, channel):
    mid = 2 * channel
    ks = jax.random.split(key, 10)
    n = lambda k, shape, s=1.0: s * jax.random.normal(k, shape, jnp.float32)
    raw = {
        "conv1_w": n(ks[0], (channel, mid), 0.1),        # (Cin, Cout) layout
        "conv1_b": n(ks[1], (mid,), 0.05),
        "bn1": {"gamma": 1.0 + n(ks[2], (mid,), 0.1),
                "beta": n(ks[3], (mid,), 0.05),
                "mean": n(ks[4], (mid,), 0.1),
                "var": 1.0 + 0.1 * jnp.abs(n(ks[5], (mid,)))},
        "conv2_w": n(ks[6], (mid, channel), 0.1),
        "conv2_b": n(ks[7], (channel,), 0.05),
        "bn2": {"gamma": 1.0 + n(ks[8], (channel,), 0.1),
                "beta": n(ks[9], (channel,), 0.05),
                "mean": jnp.zeros((channel,), jnp.float32),
                "var": jnp.ones((channel,), jnp.float32)},
    }
    return raw


def fold_params(raw):
    """Fold eval-mode BN into the preceding 1x1 conv; weights stored bf16."""
    def fold(w, b, bn):
        scale = bn["gamma"] * jax.lax.rsqrt(bn["var"] + 1e-5)
        w_f = w * scale[None, :]
        b_f = (b - bn["mean"]) * scale + bn["beta"]
        return w_f.astype(jnp.bfloat16), b_f.reshape(1, -1).astype(jnp.float32)

    w1, b1 = fold(raw["conv1_w"], raw["conv1_b"], raw["bn1"])
    w2, b2 = fold(raw["conv2_w"], raw["conv2_b"], raw["bn2"])
    return {"w1": w1, "b1": b1, "w2": w2, "b2": b2}


# ---------------------------------------------------------------------
# Pure-JAX f32 reference (unfolded path) for a correctness check
# ---------------------------------------------------------------------

def mask_layer_ref(raw, x):
    def conv1x1(x, w, b):
        return jnp.einsum("bchw,cd->bdhw", x, w) + b[None, :, None, None]

    def bn(x, p):
        s = p["gamma"] * jax.lax.rsqrt(p["var"] + 1e-5)
        return ((x - p["mean"][None, :, None, None]) * s[None, :, None, None]
                + p["beta"][None, :, None, None])

    h = jax.nn.silu(bn(conv1x1(x, raw["conv1_w"], raw["conv1_b"]), raw["bn1"]))
    m = jax.nn.sigmoid(bn(conv1x1(h, raw["conv2_w"], raw["conv2_b"]), raw["bn2"]))
    return m * x


# ---------------------------------------------------------------------
# main
# ---------------------------------------------------------------------

if __name__ == "__main__":
    key = jax.random.PRNGKey(0)
    kp, kx = jax.random.split(key)

    B, C, H, W = 2, 32, 16, 16
    raw = init_raw_params(kp, C)
    params = fold_params(raw)
    x = jax.random.normal(kx, (B, C, H, W), jnp.float32)

    fwd = jax.jit(mask_layer)
    out = fwd(params, x)
    jax.block_until_ready(out)

    assert out.shape == (B, C, H, W)
    assert out.dtype == jnp.float32

    ref = mask_layer_ref(raw, x)
    err = float(jnp.max(jnp.abs(out - ref)))
    assert err < 5e-2, f"max abs error vs f32 reference too large: {err}"

    print("KERNEL_OK")
</pallas_src>

<mosaic_0001>
module attributes {stable_mosaic.version = 11 : i64} {
  func.func @_mask_layer_kernel(%arg0: i32, %arg1: memref<512x32xf32, #tpu.memory_space<vmem>>, %arg2: memref<32x64xbf16, #tpu.memory_space<vmem>>, %arg3: memref<1x64xf32, #tpu.memory_space<vmem>>, %arg4: memref<64x32xbf16, #tpu.memory_space<vmem>>, %arg5: memref<1x32xf32, #tpu.memory_space<vmem>>, %arg6: memref<512x32xf32, #tpu.memory_space<vmem>>) attributes {dimension_semantics = [#tpu.dimension_semantics<parallel>], iteration_bounds = array<i64: 1>, scalar_prefetch = 0 : i64, scratch_operands = 0 : i64, tpu.core_type = #tpu.core_type<tc>, window_params = [{transform_indices = @transform_0, window_bounds = array<i64: 512, 32>}, {pipeline_mode = #tpu.pipeline_mode<synchronous>, transform_indices = @transform_1, window_bounds = array<i64: 32, 64>}, {pipeline_mode = #tpu.pipeline_mode<synchronous>, transform_indices = @transform_2, window_bounds = array<i64: 1, 64>}, {pipeline_mode = #tpu.pipeline_mode<synchronous>, transform_indices = @transform_3, window_bounds = array<i64: 64, 32>}, {pipeline_mode = #tpu.pipeline_mode<synchronous>, transform_indices = @transform_4, window_bounds = array<i64: 1, 32>}, {transform_indices = @transform_5, window_bounds = array<i64: 512, 32>}]} {
    %c0 = arith.constant 0 : index
    %c0_0 = arith.constant 0 : index
    %0 = vector.load %arg1[%c0, %c0_0] : memref<512x32xf32, #tpu.memory_space<vmem>>, vector<512x32xf32>
    %1 = arith.truncf %0 : vector<512x32xf32> to vector<512x32xbf16>
    %c0_1 = arith.constant 0 : index
    %c0_2 = arith.constant 0 : index
    %2 = vector.load %arg2[%c0_1, %c0_2] : memref<32x64xbf16, #tpu.memory_space<vmem>>, vector<32x64xbf16>
    %cst = arith.constant dense<0.000000e+00> : vector<512x64xf32>
    %3 = tpu.matmul %1, %2, %cst {dimension_numbers = #tpu.dot_dimension_numbers<[1], [0], [0], [1], [0, 0, 1, 1], [], []>} : vector<512x32xbf16>, vector<32x64xbf16>, vector<512x64xf32> -> vector<512x64xf32>
    %c0_3 = arith.constant 0 : index
    %c0_4 = arith.constant 0 : index
    %4 = vector.load %arg3[%c0_3, %c0_4] : memref<1x64xf32, #tpu.memory_space<vmem>>, vector<1x64xf32>
    %5 = vector.broadcast %4 : vector<1x64xf32> to vector<512x64xf32>
    %6 = arith.addf %3, %5 : vector<512x64xf32>
    %7 = arith.negf %6 : vector<512x64xf32>
    %8 = math.exp %7 : vector<512x64xf32>
    %cst_5 = arith.constant 1.000000e+00 : f32
    %9 = vector.broadcast %cst_5 : f32 to vector<512x64xf32>
    %10 = arith.addf %9, %8 : vector<512x64xf32>
    %11 = arith.divf %9, %10 : vector<512x64xf32>
    %12 = arith.mulf %6, %11 : vector<512x64xf32>
    %13 = arith.truncf %12 : vector<512x64xf32> to vector<512x64xbf16>
    %c0_6 = arith.constant 0 : index
    %c0_7 = arith.constant 0 : index
    %14 = vector.load %arg4[%c0_6, %c0_7] : memref<64x32xbf16, #tpu.memory_space<vmem>>, vector<64x32xbf16>
    %cst_8 = arith.constant dense<0.000000e+00> : vector<512x32xf32>
    %15 = tpu.matmul %13, %14, %cst_8 {dimension_numbers = #tpu.dot_dimension_numbers<[1], [0], [0], [1], [0, 0, 1, 1], [], []>} : vector<512x64xbf16>, vector<64x32xbf16>, vector<512x32xf32> -> vector<512x32xf32>
    %c0_9 = arith.constant 0 : index
    %c0_10 = arith.constant 0 : index
    %16 = vector.load %arg5[%c0_9, %c0_10] : memref<1x32xf32, #tpu.memory_space<vmem>>, vector<1x32xf32>
    %17 = vector.broadcast %16 : vector<1x32xf32> to vector<512x32xf32>
    %18 = arith.addf %15, %17 : vector<512x32xf32>
    %19 = arith.negf %18 : vector<512x32xf32>
    %20 = math.exp %19 : vector<512x32xf32>
    %cst_11 = arith.constant 1.000000e+00 : f32
    %21 = vector.broadcast %cst_11 : f32 to vector<512x32xf32>
    %22 = arith.addf %21, %20 : vector<512x32xf32>
    %23 = arith.divf %21, %22 : vector<512x32xf32>
    %24 = arith.mulf %23, %0 : vector<512x32xf32>
    %c0_12 = arith.constant 0 : index
    %c0_13 = arith.constant 0 : index
    %25 = vector.load %arg6[%c0_12, %c0_13] : memref<512x32xf32, #tpu.memory_space<vmem>>, vector<512x32xf32>
    tpu.vector_store %arg6[%c0_12, %c0_13], %24 {strides = array<i32>} : memref<512x32xf32, #tpu.memory_space<vmem>>, vector<512x32xf32>,
    return
  }
  func.func @transform_0(%arg0: i32) -> (i32, i32) {
    %c0_i32 = arith.constant 0 : i32
    %c0_i32_0 = arith.constant 0 : i32
    return %arg0, %c0_i32 : i32, i32
  }
  func.func @transform_1(%arg0: i32) -> (i32, i32) {
    %c0_i32 = arith.constant 0 : i32
    %c0_i32_0 = arith.constant 0 : i32
    %c0_i32_1 = arith.constant 0 : i32
    return %c0_i32, %c0_i32_0 : i32, i32
  }
  func.func @transform_2(%arg0: i32) -> (i32, i32) {
    %c0_i32 = arith.constant 0 : i32
    %c0_i32_0 = arith.constant 0 : i32
    %c0_i32_1 = arith.constant 0 : i32
    return %c0_i32, %c0_i32_0 : i32, i32
  }
  func.func @transform_3(%arg0: i32) -> (i32, i32) {
    %c0_i32 = arith.constant 0 : i32
    %c0_i32_0 = arith.constant 0 : i32
    %c0_i32_1 = arith.constant 0 : i32
    return %c0_i32, %c0_i32_0 : i32, i32
  }
  func.func @transform_4(%arg0: i32) -> (i32, i32) {
    %c0_i32 = arith.constant 0 : i32
    %c0_i32_0 = arith.constant 0 : i32
    %c0_i32_1 = arith.constant 0 : i32
    return %c0_i32, %c0_i32_0 : i32, i32
  }
  func.func @transform_5(%arg0: i32) -> (i32, i32) {
    %c0_i32 = arith.constant 0 : i32
    %c0_i32_0 = arith.constant 0 : i32
    return %arg0, %c0_i32 : i32, i32
  }
}

</mosaic_0001>

<bundles_post_ra>
// kernel: mask_layer.1
= control target key start
LH: loop header
LB: loop body
LE: loop exit
PB: predicated region body
PF: predicated region fallthrough
CT: control target
= control target key end

     0   :  { %10 = vsyncpa [#allocation3], 0  ;;  %s3618_s0 = inlined_call_operand.hbm [shape: f32[512,32], index: 0, kind: input, shape index: {}]   ;;  %s3619_s1 = inlined_call_operand.vmem [shape: bf16[32,64], index: 1, kind: input, shape index: {}]   ;;  %s3620_s2 = inlined_call_operand.vmem [shape: f32[1,64], index: 2, kind: input, shape index: {}]   ;;  %s3621_s3 = inlined_call_operand.vmem [shape: bf16[64,32], index: 3, kind: input, shape index: {}]   ;;  %s3622_s4 = inlined_call_operand.vmem [shape: f32[1,32], index: 4, kind: input, shape index: {}]   ;;  %s3623_s5 = inlined_call_operand.hbm [shape: f32[512,32], index: 5, kind: output, shape index: {}]  }
   0x1   :  { %11 = vsyncpa [#allocation4], 0  ;;  %s3021_s18 = smov [#allocation2]   ;;  %s2973_s22 = scalar_lea.hbm %s3618_s0, 8192 }
   0x2   :  { %s17_s19 = sshll.u32 %s3021_s18, 4  ;;  %p2974_p0 = scmp.ne.s32.totalorder %s3618_s0, %s2973_s22  ;;  %s18_s19 = int_to_ptr.vmem [resolvable:$true] %s17_s19 }
   0x3   :  { %p2977_p1 = scmp.lt.u32.totalorder %s2973_s22, %s3618_s0 }
   0x5   :  { %p2979_p2 = pnand %p2977_p1, %p2974_p0 }
   0x7   :  { %2982 = shalt.err (!%p2979_p2)
}
   0x8   :  { %s2983_s27 = scalar_lea.vmem %s18_s19, 8192  ;;  %p2988_p4 = scmp.lt.s32.totalorder %s18_s19, %s18_s19 }
   0x9   :  { %p2984_p3 = scmp.ne.s32.totalorder %s18_s19, %s2983_s27  ;;  %p2989_p5 = scmp.lt.s32.totalorder %s2983_s27, %s2983_s27 }
   0xb   :  { %p2990_p6 = por %p2989_p5, %p2988_p4 }
   0xd   :  { %p2991_p7 = pnand %p2990_p6, %p2984_p3 }
   0xf   :  { %2994 = shalt.err (!%p2991_p7)
}
  0x10   :  { %s3022_s28 = smov 128   ;;  %s3023_s29 = smov 8  }
  0x11   :  { %23 = dma.hbm_to_vmem [thread:$0]  %s3618_s0, 8192, %s18_s19, [#allocation3], %s3022_s28, %s3022_s28, %s3023_s29  }
  0x12   :  { %3017 = dma.done.wait [#allocation3], 8192  }
  0x13   :  { %3018 = vsyncadd [#allocation3], 4294959104  ;;  %v2389_v0 = vld [vmem:[%s3619_s1] sm:$0xff]   ;;  %v2390_v1 = vld [vmem:[%s3619_s1 + $0x8] sm:$0xff]   ;;  %vm155_vm0 = vcmask 261120   ;;  %vm1060_vm1 = vcmask 523264  }
  0x14   :  { %2245 = vmatprep.subr.bf16.mxu0 %v2389_v0  ;;  %v36_v2 = vld [vmem:[#allocation2] sm:$0xff]  ;;  %v37_v3 = vld [vmem:[#allocation2 + $0x8] sm:$0xff]  ;;  %v38_v5 = vld [vmem:[#allocation2 + $0x10] sm:$0xff] }
  0x15   :  { %2246 = vmatpush3.bf16.msra.mxu0 %v2389_v0  ;;  %v100_v4 = vpack.c.bf16 %v37_v3, %v36_v2  ;;  %v39_v6 = vld [vmem:[#allocation2 + $0x18] sm:$0xff]  ;;  %v40_v7 = vld [vmem:[#allocation2 + $0x20] sm:$0xff]  ;;  %v41_v8 = vld [vmem:[#allocation2 + $0x28] sm:$0xff] }
  0x16   :  { %2247 = vmatprep.subr.bf16.mxu0 %v2390_v1  ;;  %v101_v9 = vpack.c.bf16 %v39_v6, %v38_v5  ;;  %v102_v10 = vpack.c.bf16 %v41_v8, %v40_v7  ;;  %v42_v11 = vld [vmem:[#allocation2 + $0x30] sm:$0xff]  ;;  %v43_v12 = vld [vmem:[#allocation2 + $0x38] sm:$0xff]  ;;  %v44_v13 = vld [vmem:[#allocation2 + $0x40] sm:$0xff] }
  0x17   :  { %2249 = vmatprep.mubr.msk.bf16.mxu0 %vm155_vm0, %v100_v4  ;;  %v45_v14 = vld [vmem:[#allocation2 + $0x48] sm:$0xff]  ;;  %v103_v15 = vpack.c.bf16 %v43_v12, %v42_v11  ;;  %v46_v17 = vld [vmem:[#allocation2 + $0x50] sm:$0xff]  ;;  %v47_v18 = vld [vmem:[#allocation2 + $0x58] sm:$0xff] }
  0x18   :  { %v104_v16 = vpack.c.bf16 %v45_v14, %v44_v13  ;;  %v48_v19 = vld [vmem:[#allocation2 + $0x60] sm:$0xff]  ;;  %v49_v20 = vld [vmem:[#allocation2 + $0x68] sm:$0xff]  ;;  %v105_v21 = vpack.c.bf16 %v47_v18, %v46_v17  ;;  %v50_v23 = vld [vmem:[#allocation2 + $0x70] sm:$0xff] }
  0x19   :  { %2248 = vmatpush3.bf16.msra.mxu0 %v2390_v1  ;;  %v106_v22 = vpack.c.bf16 %v49_v20, %v48_v19  ;;  %v51_v24 = vld [vmem:[#allocation2 + $0x78] sm:$0xff]  ;;  %v52_v25 = vld [vmem:[#allocation2 + $0x80] sm:$0xff]  ;;  %v53_v26 = vld [vmem:[#allocation2 + $0x88] sm:$0xff] }
  0x1a   :  { %v107_v27 = vpack.c.bf16 %v51_v24, %v50_v23  ;;  %v108_v28 = vpack.c.bf16 %v53_v26, %v52_v25  ;;  %v54_v29 = vld [vmem:[#allocation2 + $0x90] sm:$0xff]  ;;  %v55_v30 = vld [vmem:[#allocation2 + $0x98] sm:$0xff]  ;;  %v56_v31 = vld [vmem:[#allocation2 + $0xa0] sm:$0xff] }
  0x1b   :  { %v57_v32 = vld [vmem:[#allocation2 + $0xa8] sm:$0xff]  ;;  %v109_v33 = vpack.c.bf16 %v55_v30, %v54_v29  ;;  %v58_v35 = vld [vmem:[#allocation2 + $0xb0] sm:$0xff]  ;;  %v59_v36 = vld [vmem:[#allocation2 + $0xb8] sm:$0xff] }
  0x1c   :  { %2250 = vmatmul.mubr.msk.bf16.vlgmr.msra.gmra.mrb[0].mxu0 %vm155_vm0, %v101_v9  ;;  %v110_v34 = vpack.c.bf16 %v57_v32, %v56_v31  ;;  %v60_v37 = vld [vmem:[#allocation2 + $0xc0] sm:$0xff]  ;;  %v61_v38 = vld [vmem:[#allocation2 + $0xc8] sm:$0xff]  ;;  %v111_v39 = vpack.c.bf16 %v59_v36, %v58_v35  ;;  %v62_v41 = vld [vmem:[#allocation2 + $0xd0] sm:$0xff] }
  0x1d   :  { %2253 = vmatprep.mubr.msk.bf16.mxu0 %vm155_vm0, %v102_v10  ;;  %v112_v40 = vpack.c.bf16 %v61_v38, %v60_v37  ;;  %v63_v42 = vld [vmem:[#allocation2 + $0xd8] sm:$0xff]  ;;  %v64_v43 = vld [vmem:[#allocation2 + $0xe0] sm:$0xff]  ;;  %v65_v44 = vld [vmem:[#allocation2 + $0xe8] sm:$0xff] }
  0x1e   :  { %v113_v45 = vpack.c.bf16 %v63_v42, %v62_v41  ;;  %v114_v46 = vpack.c.bf16 %v65_v44, %v64_v43  ;;  %v66_v47 = vld [vmem:[#allocation2 + $0xf0] sm:$0xff]  ;;  %v67_v48 = vld [vmem:[#allocation2 + $0xf8] sm:$0xff]  ;;  %v68_v49 = vld [vmem:[#allocation2 + $0x100] sm:$0xff] }
  0x1f   :  { %v69_v50 = vld [vmem:[#allocation2 + $0x108] sm:$0xff]  ;;  %v115_v51 = vpack.c.bf16 %v67_v48, %v66_v47  ;;  %v70_v53 = vld [vmem:[#allocation2 + $0x110] sm:$0xff]  ;;  %v71_v54 = vld [vmem:[#allocation2 + $0x118] sm:$0xff] }
  0x20   :  { %v116_v52 = vpack.c.bf16 %v69_v50, %v68_v49  ;;  %v72_v55 = vld [vmem:[#allocation2 + $0x120] sm:$0xff]  ;;  %v73_v56 = vld [vmem:[#allocation2 + $0x128] sm:$0xff]  ;;  %v117_v57 = vpack.c.bf16 %v71_v54, %v70_v53  ;;  %v74_v59 = vld [vmem:[#allocation2 + $0x130] sm:$0xff] }
  0x21   :  { %v118_v58 = vpack.c.bf16 %v73_v56, %v72_v55  ;;  %v75_v60 = vld [vmem:[#allocation2 + $0x138] sm:$0xff]  ;;  %v76_v61 = vld [vmem:[#allocation2 + $0x140] sm:$0xff]  ;;  %v77_v62 = vld [vmem:[#allocation2 + $0x148] sm:$0xff] }
  0x22   :  { %v119_v63 = vpack.c.bf16 %v75_v60, %v74_v59  ;;  %v120_v0 = vpack.c.bf16 %v77_v62, %v76_v61  ;;  %v78_v1 = vld [vmem:[#allocation2 + $0x150] sm:$0xff]  ;;  %v79_v2 = vld [vmem:[#allocation2 + $0x158] sm:$0xff]  ;;  %v80_v3 = vld [vmem:[#allocation2 + $0x160] sm:$0xff] }
  0x23   :  { %v81_v4 = vld [vmem:[#allocation2 + $0x168] sm:$0xff]  ;;  %v121_v5 = vpack.c.bf16 %v79_v2, %v78_v1  ;;  %v82_v7 = vld [vmem:[#allocation2 + $0x170] sm:$0xff]  ;;  %v83_v8 = vld [vmem:[#allocation2 + $0x178] sm:$0xff] }
  0x24   :  { %2254 = vmatmul.mubr.msk.bf16.gmra.mrb[4].mxu0 %vm155_vm0, %v103_v15  ;;  %v122_v6 = vpack.c.bf16 %v81_v4, %v80_v3  ;;  %v84_v9 = vld [vmem:[#allocation2 + $0x180] sm:$0xff]  ;;  %v85_v10 = vld [vmem:[#allocation2 + $0x188] sm:$0xff]  ;;  %v123_v11 = vpack.c.bf16 %v83_v8, %v82_v7  ;;  %v86_v13 = vld [vmem:[#allocation2 + $0x190] sm:$0xff] }
  0x25   :  { %2257 = vmatprep.mubr.msk.bf16.mxu0 %vm155_vm0, %v104_v16  ;;  %v124_v12 = vpack.c.bf16 %v85_v10, %v84_v9  ;;  %v87_v14 = vld [vmem:[#allocation2 + $0x198] sm:$0xff]  ;;  %v88_v15 = vld [vmem:[#allocation2 + $0x1a0] sm:$0xff]  ;;  %v89_v16 = vld [vmem:[#allocation2 + $0x1a8] sm:$0xff] }
  0x26   :  { %v125_v17 = vpack.c.bf16 %v87_v14, %v86_v13  ;;  %v126_v18 = vpack.c.bf16 %v89_v16, %v88_v15  ;;  %v90_v19 = vld [vmem:[#allocation2 + $0x1b0] sm:$0xff]  ;;  %v91_v20 = vld [vmem:[#allocation2 + $0x1b8] sm:$0xff]  ;;  %v2391_v25 = vld [vmem:[%s3621_s3] sm:$0xff]  }
  0x27   :  { %v127_v23 = vpack.c.bf16 %v91_v20, %v90_v19  ;;  %v94_v26 = vld [vmem:[#allocation2 + $0x1d0] sm:$0xff]  ;;  %2313 = vmatprep.subr.bf16.mxu1 %v2391_v25  ;;  %v97_v29 = vld [vmem:[#allocation2 + $0x1e8] sm:$0xff]  ;;  %v99_v35 = vld [vmem:[#allocation2 + $0x1f8] sm:$0xff] }
  0x28   :  { %2314 = vmatpush3.bf16.msra.mxu1 %v2391_v25  ;;  %v2392_v30 = vld [vmem:[%s3621_s3 + $0x8] sm:$0xff]   ;;  %v2394_v37 = vld [vmem:[%s3621_s3 + $0x18] sm:$0xff]   ;;  %v3123_v38 = vld [vmem:[%s3620_s2] ss:$0 sm:$0xff] }
  0x29   :  { %2315 = vmatprep.subr.bf16.mxu1 %v2392_v30 }
  0x2c   :  { %2258 = vmatmul.mubr.msk.bf16.gmra.mrb[8].mxu0 %vm155_vm0, %v105_v21  ;;  %v92_v21 = vld [vmem:[#allocation2 + $0x1c0] sm:$0xff]  ;;  %2316 = vmatpush3.bf16.msra.mxu1 %v2392_v30 }
  0x2d   :  { %2261 = vmatprep.mubr.msk.bf16.mxu0 %vm155_vm0, %v106_v22  ;;  %v93_v22 = vld [vmem:[#allocation2 + $0x1c8] sm:$0xff] }
  0x2e   :  { %v128_v24 = vpack.c.bf16 %v93_v22, %v92_v21 }
  0x34   :  { %2262 = vmatmul.mubr.msk.bf16.gmra.mrb[12].mxu0 %vm155_vm0, %v107_v27  ;;  %v95_v27 = vld [vmem:[#allocation2 + $0x1d8] sm:$0xff] }
  0x35   :  { %2265 = vmatprep.mubr.msk.bf16.mxu0 %vm155_vm0, %v108_v28  ;;  %v96_v28 = vld [vmem:[#allocation2 + $0x1e0] sm:$0xff]  ;;  %v129_v31 = vpack.c.bf16 %v95_v27, %v94_v26 }
  0x36   :  { %v130_v32 = vpack.c.bf16 %v97_v29, %v96_v28 }
  0x3c   :  { %2266 = vmatmul.mubr.msk.bf16.gmra.mrb[16].mxu0 %vm155_vm0, %v109_v33  ;;  %v2393_v33 = vld [vmem:[%s3621_s3 + $0x10] sm:$0xff]  }
  0x3d   :  { %2269 = vmatprep.mubr.msk.bf16.mxu0 %vm155_vm0, %v110_v34  ;;  %v98_v34 = vld [vmem:[#allocation2 + $0x1f0] sm:$0xff]  ;;  %2317 = vmatprep.subr.bf16.mxu1 %v2393_v33 }
  0x3e   :  { %2318 = vmatpush3.bf16.msra.mxu1 %v2393_v33  ;;  %v131_v36 = vpack.c.bf16 %v99_v35, %v98_v34 }
  0x3f   :  { %2319 = vmatprep.subr.bf16.mxu1 %v2394_v37 }
  0x42   :  { %2320 = vmatpush3.bf16.msra.mxu1 %v2394_v37 }
  0x44   :  { %2270 = vmatmul.mubr.msk.bf16.gmra.mrb[20].mxu0 %vm155_vm0, %v111_v39 }
  0x45   :  { %2273 = vmatprep.mubr.msk.bf16.mxu0 %vm155_vm0, %v112_v40 }
  0x4c   :  { %2274 = vmatmul.mubr.msk.bf16.gmra.mrb[24].mxu0 %vm155_vm0, %v113_v45 }
  0x4d   :  { %2277 = vmatprep.mubr.msk.bf16.mxu0 %vm155_vm0, %v114_v46 }
  0x54   :  { %2278 = vmatmul.mubr.msk.bf16.gmra.mrb[28].mxu0 %vm155_vm0, %v115_v51 }
  0x55   :  { %2281 = vmatprep.mubr.msk.bf16.mxu0 %vm155_vm0, %v116_v52 }
  0x5c   :  { %2282 = vmatmul.mubr.msk.bf16.gmra.mrb[32].mxu0 %vm155_vm0, %v117_v57 }
  0x5d   :  { %2285 = vmatprep.mubr.msk.bf16.mxu0 %vm155_vm0, %v118_v58 }
  0x64   :  { %2286 = vmatmul.mubr.msk.bf16.gmra.mrb[36].mxu0 %vm155_vm0, %v119_v63 }
  0x65   :  { %2289 = vmatprep.mubr.msk.bf16.mxu0 %vm155_vm0, %v120_v0 }
  0x6c   :  { %2290 = vmatmul.mubr.msk.bf16.gmra.mrb[40].mxu0 %vm155_vm0, %v121_v5 }
  0x6d   :  { %2293 = vmatprep.mubr.msk.bf16.mxu0 %vm155_vm0, %v122_v6 }
  0x74   :  { %2294 = vmatmul.mubr.msk.bf16.gmra.mrb[44].mxu0 %vm155_vm0, %v123_v11 }
  0x75   :  { %2297 = vmatprep.mubr.msk.bf16.mxu0 %vm155_vm0, %v124_v12 }
  0x7c   :  { %2298 = vmatmul.mubr.msk.bf16.gmra.mrb[48].mxu0 %vm155_vm0, %v125_v17 }
  0x7d   :  { %2301 = vmatprep.mubr.msk.bf16.mxu0 %vm155_vm0, %v126_v18 }
  0x84   :  { %2302 = vmatmul.mubr.msk.bf16.gmra.mrb[52].mxu0 %vm155_vm0, %v127_v23 }
  0x85   :  { %2305 = vmatprep.mubr.msk.bf16.mxu0 %vm155_vm0, %v128_v24 }
  0x8c   :  { %2306 = vmatmul.mubr.msk.bf16.gmra.mrb[56].mxu0 %vm155_vm0, %v129_v31 }
  0x8d   :  { %2309 = vmatprep.mubr.msk.bf16.mxu0 %vm155_vm0, %v130_v32 }
  0x94   :  { %2310 = vmatmul.mubr.msk.bf16.gmra.mrb[60].mxu0 %vm155_vm0, %v131_v36 }
  0xef   :  { %v2251_v39 = vpop.f32.mrb[0].mxu0 }
  0xf0   :  { %v3126_v40 = vadd.f32 %v2251_v39, %v3123_v38  ;;  %v286_v41 = vpop.f32.mrb[1].mxu0 }
  0xf1   :  { %v3129_v42 = vadd.f32 %v3123_v38, %v286_v41  ;;  %v2252_v43 = vpop.f32.mrb[2].mxu0 }
  0xf2   :  { %v2012_v44 = vmul.f32 -1.442695, %v3126_v40  ;;  %v3133_v45 = vadd.f32 %v2252_v43, %v3123_v38  ;;  %v289_v46 = vpop.f32.mrb[3].mxu0 }
  0xf3   :  { %v2010_v47 = vmul.f32 -1.442695, %v3129_v42  ;;  %v3137_v48 = vadd.f32 %v3123_v38, %v289_v46 }
  0xf4   :  { %2395 = vpow2.f32 %v2012_v44  ;;  %v2013_v49 = vmul.f32 -1.442695, %v3133_v45 }
  0xf5   :  { %2397 = vpow2.f32 %v2010_v47  ;;  %v2011_v50 = vmul.f32 -1.442695, %v3137_v48 }
  0xf6   :  { %2399 = vpow2.f32 %v2013_v49 }
  0xf7   :  { %2401 = vpow2.f32 %v2011_v50  ;;  %v2255_v51 = vpop.f32.mrb[4].mxu0 }
  0xf8   :  { %v3142_v52 = vadd.f32 %v2255_v51, %v3123_v38  ;;  %v302_v53 = vpop.f32.mrb[5].mxu0 }
  0xf9   :  { %v3145_v54 = vadd.f32 %v3123_v38, %v302_v53  ;;  %v2256_v55 = vpop.f32.mrb[6].mxu0 }
  0xfa   :  { %v2016_v56 = vmul.f32 -1.442695, %v3142_v52  ;;  %v3149_v57 = vadd.f32 %v2256_v55, %v3123_v38  ;;  %v305_v58 = vpop.f32.mrb[7].mxu0 }
  0xfb   :  { %v2014_v59 = vmul.f32 -1.442695, %v3145_v54  ;;  %v3153_v60 = vadd.f32 %v3123_v38, %v305_v58 }
  0xfc   :  { %2403 = vpow2.f32 %v2016_v56  ;;  %v2017_v61 = vmul.f32 -1.442695, %v3149_v57 }
  0xfd   :  { %2405 = vpow2.f32 %v2014_v59  ;;  %v2015_v62 = vmul.f32 -1.442695, %v3153_v60 }
  0xfe   :  { %v2396_v63 = vpop.eup %2395  ;;  %2407 = vpow2.f32 %v2017_v61 }
  0xff   :  { %v2398_v0 = vpop.eup %2397  ;;  %v735_v1 = vadd.f32 1.0, %v2396_v63  ;;  %2409 = vpow2.f32 %v2015_v62  ;;  %v2259_v2 = vpop.f32.mrb[8].mxu0 }
 0x100   :  { %v2400_v3 = vpop.eup %2399  ;;  %v733_v4 = vadd.f32 1.0, %v2398_v0  ;;  %v3158_v5 = vadd.f32 %v2259_v2, %v3123_v38  ;;  %v318_v6 = vpop.f32.mrb[9].mxu0 }
 0x101   :  { %v2402_v7 = vpop.eup %2401  ;;  %2411 = vrcp.f32 %v735_v1  ;;  %v736_v8 = vadd.f32 1.0, %v2400_v3  ;;  %v3161_v9 = vadd.f32 %v3123_v38, %v318_v6  ;;  %v2260_v10 = vpop.f32.mrb[10].mxu0 }
 0x102   :  { %2413 = vrcp.f32 %v733_v4  ;;  %v734_v11 = vadd.f32 1.0, %v2402_v7  ;;  %v2020_v12 = vmul.f32 -1.442695, %v3158_v5  ;;  %v3165_v13 = vadd.f32 %v2260_v10, %v3123_v38  ;;  %v321_v14 = vpop.f32.mrb[11].mxu0 }
 0x103   :  { %2415 = vrcp.f32 %v736_v8  ;;  %v2018_v15 = vmul.f32 -1.442695, %v3161_v9  ;;  %v3169_v16 = vadd.f32 %v3123_v38, %v321_v14 }
 0x104   :  { %2417 = vrcp.f32 %v734_v11  ;;  %v2021_v17 = vmul.f32 -1.442695, %v3165_v13 }
 0x105   :  { %2419 = vpow2.f32 %v2020_v12  ;;  %v2019_v18 = vmul.f32 -1.442695, %v3169_v16 }
 0x106   :  { %v2404_v19 = vpop.eup %2403  ;;  %2421 = vpow2.f32 %v2018_v15 }
 0x107   :  { %v2406_v20 = vpop.eup %2405  ;;  %v739_v21 = vadd.f32 1.0, %v2404_v19  ;;  %2423 = vpow2.f32 %v2021_v17  ;;  %v2263_v22 = vpop.f32.mrb[12].mxu0 }
 0x108   :  { %v2408_v23 = vpop.eup %2407  ;;  %v737_v24 = vadd.f32 1.0, %v2406_v20  ;;  %2425 = vpow2.f32 %v2019_v18  ;;  %v3174_v25 = vadd.f32 %v2263_v22, %v3123_v38  ;;  %v334_v26 = vpop.f32.mrb[13].mxu0 }
 0x109   :  { %v2410_v27 = vpop.eup %2409  ;;  %2427 = vrcp.f32 %v739_v21  ;;  %v740_v28 = vadd.f32 1.0, %v2408_v23  ;;  %v3177_v29 = vadd.f32 %v3123_v38, %v334_v26  ;;  %v2264_v30 = vpop.f32.mrb[14].mxu0 }
 0x10a   :  { %2429 = vrcp.f32 %v737_v24  ;;  %v738_v31 = vadd.f32 1.0, %v2410_v27  ;;  %v2024_v32 = vmul.f32 -1.442695, %v3174_v25  ;;  %v3181_v33 = vadd.f32 %v2264_v30, %v3123_v38  ;;  %v337_v34 = vpop.f32.mrb[15].mxu0 }
 0x10b   :  { %v2412_v35 = vpop.eup %2411  ;;  %2431 = vrcp.f32 %v740_v28  ;;  %v2022_v36 = vmul.f32 -1.442695, %v3177_v29  ;;  %v3185_v37 = vadd.f32 %v3123_v38, %v337_v34 }
 0x10c   :  { %v2414_v39 = vpop.eup %2413  ;;  %2433 = vrcp.f32 %v738_v31  ;;  %v2025_v41 = vmul.f32 -1.442695, %v3181_v33  ;;  %v927_v47 = vmul.f32 %v2412_v35, %v3126_v40 }
 0x10d   :  { %v2416_v43 = vpop.eup %2415  ;;  %2435 = vpow2.f32 %v2024_v32  ;;  %v2023_v44 = vmul.f32 -1.442695, %v3185_v37  ;;  %v925_v51 = vmul.f32 %v2414_v39, %v3129_v42 }
 0x10e   :  { %v2418_v46 = vpop.eup %2417  ;;  %v928_v49 = vmul.f32 %v2416_v43, %v3133_v45  ;;  %2437 = vpow2.f32 %v2022_v36 }
 0x10f   :  { %v2420_v50 = vpop.eup %2419  ;;  %v926_v53 = vmul.f32 %v2418_v46, %v3137_v48  ;;  %2439 = vpow2.f32 %v2025_v41  ;;  %v2267_v55 = vpop.f32.mrb[16].mxu0 }
 0x110   :  { %v2422_v56 = vpop.eup %2421  ;;  %v990_v58 = vpack.c.bf16 %v928_v49, %v927_v47  ;;  %v743_v59 = vadd.f32 1.0, %v2420_v50  ;;  %2441 = vpow2.f32 %v2023_v44  ;;  %v3194_v61 = vadd.f32 %v2267_v55, %v3123_v38  ;;  %v350_v62 = vpop.f32.mrb[17].mxu0 }
 0x111   :  { %v2424_v40 = vpop.eup %2423  ;;  %v741_v63 = vadd.f32 1.0, %v2422_v56  ;;  %v3197_v45 = vadd.f32 %v3123_v38, %v350_v62  ;;  %v2268_v0 = vpop.f32.mrb[18].mxu0  ;;  %v989_v42 = vpack.c.bf16 %v926_v53, %v925_v51 }
 0x112   :  { %v2426_v1 = vpop.eup %2425  ;;  %2443 = vrcp.f32 %v743_v59  ;;  %v744_v48 = vadd.f32 1.0, %v2424_v40  ;;  %v2028_v2 = vmul.f32 -1.442695, %v3194_v61  ;;  %v3201_v3 = vadd.f32 %v2268_v0, %v3123_v38  ;;  %v353_v4 = vpop.f32.mrb[19].mxu0 }
 0x113   :  { %v2428_v6 = vpop.eup %2427  ;;  %2445 = vrcp.f32 %v741_v63  ;;  %v742_v7 = vadd.f32 1.0, %v2426_v1  ;;  %v2026_v8 = vmul.f32 -1.442695, %v3197_v45  ;;  %v3205_v10 = vadd.f32 %v3123_v38, %v353_v4  ;;  %2321 = vmatprep.mubr.msk.bf16.mxu1 %vm1060_vm1, %v989_v42 }
 0x114   :  { %v2430_v11 = vpop.eup %2429  ;;  %2447 = vrcp.f32 %v744_v48  ;;  %v2029_v12 = vmul.f32 -1.442695, %v3201_v3  ;;  %2322 = vmatmul.mubr.msk.bf16.vlgmr.msra.gmra.mrb[0].mxu1 %vm1060_vm1, %v990_v58  ;;  %v931_v18 = vmul.f32 %v2428_v6, %v3142_v52 }
 0x115   :  { %v2432_v14 = vpop.eup %2431  ;;  %2449 = vrcp.f32 %v742_v7  ;;  %v2027_v15 = vmul.f32 -1.442695, %v3205_v10  ;;  %v929_v21 = vmul.f32 %v2430_v11, %v3145_v54 }
 0x116   :  { %v2434_v17 = vpop.eup %2433  ;;  %v932_v19 = vmul.f32 %v2432_v14, %v3149_v57  ;;  %2451 = vpow2.f32 %v2028_v2 }
 0x117   :  { %v2436_v20 = vpop.eup %2435  ;;  %v930_v22 = vmul.f32 %v2434_v17, %v3153_v60  ;;  %2453 = vpow2.f32 %v2026_v8  ;;  %v2271_v23 = vpop.f32.mrb[20].mxu0 }
 0x118   :  { %v2438_v24 = vpop.eup %2437  ;;  %v992_v26 = vpack.c.bf16 %v932_v19, %v931_v18  ;;  %v747_v27 = vadd.f32 1.0, %v2436_v20  ;;  %2455 = vpow2.f32 %v2029_v12  ;;  %v3216_v28 = vadd.f32 %v2271_v23, %v3123_v38  ;;  %v366_v30 = vpop.f32.mrb[21].mxu0 }
 0x119   :  { %v2440_v31 = vpop.eup %2439  ;;  %v991_v52 = vpack.c.bf16 %v930_v22, %v929_v21  ;;  %v745_v32 = vadd.f32 1.0, %v2438_v24  ;;  %2457 = vpow2.f32 %v2027_v15  ;;  %v3219_v57 = vadd.f32 %v3123_v38, %v366_v30  ;;  %v2272_v54 = vpop.f32.mrb[22].mxu0 }
 0x11a   :  { %v2442_v34 = vpop.eup %2441  ;;  %2459 = vrcp.f32 %v747_v27  ;;  %v748_v60 = vadd.f32 1.0, %v2440_v31  ;;  %v2032_v35 = vmul.f32 -1.442695, %v3216_v28  ;;  %v3223_v36 = vadd.f32 %v2272_v54, %v3123_v38  ;;  %v369_v39 = vpop.f32.mrb[23].mxu0 }
 0x11b   :  { %2461 = vrcp.f32 %v745_v32  ;;  %v746_v41 = vadd.f32 1.0, %v2442_v34  ;;  %v2030_v43 = vmul.f32 -1.442695, %v3219_v57  ;;  %v3227_v44 = vadd.f32 %v3123_v38, %v369_v39  ;;  %2325 = vmatprep.mubr.msk.bf16.mxu1 %vm1060_vm1, %v991_v52 }
 0x11c   :  { %v2444_v46 = vpop.eup %2443  ;;  %2463 = vrcp.f32 %v748_v60  ;;  %v2033_v47 = vmul.f32 -1.442695, %v3223_v36  ;;  %2326 = vmatmul.mubr.msk.bf16.gmra.mrb[4].mxu1 %vm1060_vm1, %v992_v26 }
 0x11d   :  { %v2446_v49 = vpop.eup %2445  ;;  %2465 = vrcp.f32 %v746_v41  ;;  %v2031_v50 = vmul.f32 -1.442695, %v3227_v44  ;;  %v935_v55 = vmul.f32 %v2444_v46, %v3158_v5 }
 0x11e   :  { %v2448_v51 = vpop.eup %2447  ;;  %2467 = vpow2.f32 %v2032_v35  ;;  %v933_v62 = vmul.f32 %v2446_v49, %v3161_v9 }
 0x11f   :  { %v2450_v53 = vpop.eup %2449  ;;  %v936_v56 = vmul.f32 %v2448_v51, %v3165_v13  ;;  %2469 = vpow2.f32 %v2030_v43  ;;  %v2275_v58 = vpop.f32.mrb[24].mxu0 }
 0x120   :  { %v2452_v59 = vpop.eup %2451  ;;  %v934_v40 = vmul.f32 %v2450_v53, %v3169_v16  ;;  %2471 = vpow2.f32 %v2033_v47  ;;  %v3238_v63 = vadd.f32 %v2275_v58, %v3123_v38  ;;  %v382_v0 = vpop.f32.mrb[25].mxu0 }
 0x121   :  { %v2454_v42 = vpop.eup %2453  ;;  %v994_v1 = vpack.c.bf16 %v936_v56, %v935_v55  ;;  %v751_v48 = vadd.f32 1.0, %v2452_v59  ;;  %2473 = vpow2.f32 %v2031_v50  ;;  %v3241_v5 = vadd.f32 %v3123_v38, %v382_v0  ;;  %v2276_v13 = vpop.f32.mrb[26].mxu0 }
 0x122   :  { %v2456_v2 = vpop.eup %2455  ;;  %v993_v4 = vpack.c.bf16 %v934_v40, %v933_v62  ;;  %v749_v6 = vadd.f32 1.0, %v2454_v42  ;;  %v3244_v9 = vadd.f32 %v2276_v13, %v3123_v38  ;;  %v385_v16 = vpop.f32.mrb[27].mxu0  ;;  %v2036_v11 = vmul.f32 -1.442695, %v3238_v63 }
 0x123   :  { %v2458_v7 = vpop.eup %2457  ;;  %2475 = vrcp.f32 %v751_v48  ;;  %v752_v8 = vadd.f32 1.0, %v2456_v2  ;;  %v3248_v12 = vadd.f32 %v3123_v38, %v385_v16  ;;  %v2034_v17 = vmul.f32 -1.442695, %v3241_v5 }
 0x124   :  { %v2460_v14 = vpop.eup %2459  ;;  %2477 = vrcp.f32 %v749_v6  ;;  %v750_v15 = vadd.f32 1.0, %v2458_v7  ;;  %2329 = vmatprep.mubr.msk.bf16.mxu1 %vm1060_vm1, %v993_v4  ;;  %v2037_v19 = vmul.f32 -1.442695, %v3244_v9 }
 0x125   :  { %v2462_v18 = vpop.eup %2461  ;;  %2479 = vrcp.f32 %v752_v8  ;;  %2330 = vmatmul.mubr.msk.bf16.gmra.mrb[8].mxu1 %vm1060_vm1, %v994_v1  ;;  %v2035_v21 = vmul.f32 -1.442695, %v3248_v12  ;;  %v939_v23 = vmul.f32 %v2460_v14, %v3174_v25 }
 0x126   :  { %v2464_v20 = vpop.eup %2463  ;;  %2481 = vrcp.f32 %v750_v15  ;;  %v937_v30 = vmul.f32 %v2462_v18, %v3177_v29 }
 0x127   :  { %v2466_v22 = vpop.eup %2465  ;;  %v940_v24 = vmul.f32 %v2464_v20, %v3181_v33  ;;  %2483 = vpow2.f32 %v2036_v11  ;;  %v2279_v26 = vpop.f32.mrb[28].mxu0 }
 0x128   :  { %v2468_v27 = vpop.eup %2467  ;;  %v938_v31 = vmul.f32 %v2466_v22, %v3185_v37  ;;  %2485 = vpow2.f32 %v2034_v17  ;;  %v3260_v52 = vadd.f32 %v2279_v26, %v3123_v38  ;;  %v398_v32 = vpop.f32.mrb[29].mxu0 }
 0x129   :  { %v2470_v54 = vpop.eup %2469  ;;  %v996_v34 = vpack.c.bf16 %v940_v24, %v939_v23  ;;  %v755_v60 = vadd.f32 1.0, %v2468_v27  ;;  %2487 = vpow2.f32 %v2037_v19  ;;  %v3263_v25 = vadd.f32 %v3123_v38, %v398_v32  ;;  %v2280_v33 = vpop.f32.mrb[30].mxu0 }
 0x12a   :  { %v2472_v35 = vpop.eup %2471  ;;  %v995_v39 = vpack.c.bf16 %v938_v31, %v937_v30  ;;  %v753_v41 = vadd.f32 1.0, %v2470_v54  ;;  %2489 = vpow2.f32 %v2035_v21  ;;  %v401_v29 = vpop.f32.mrb[31].mxu0  ;;  %v2040_v46 = vmul.f32 -1.442695, %v3260_v52 }
 0x12b   :  { %v2474_v43 = vpop.eup %2473  ;;  %2491 = vrcp.f32 %v755_v60  ;;  %v756_v37 = vadd.f32 1.0, %v2472_v35  ;;  %v3267_v47 = vadd.f32 %v2280_v33, %v3123_v38  ;;  %v2038_v50 = vmul.f32 -1.442695, %v3263_v25 }
 0x12c   :  { %2493 = vrcp.f32 %v753_v41  ;;  %v754_v49 = vadd.f32 1.0, %v2474_v43  ;;  %v3271_v51 = vadd.f32 %v3123_v38, %v401_v29  ;;  %2333 = vmatprep.mubr.msk.bf16.mxu1 %vm1060_vm1, %v995_v39 }
 0x12d   :  { %v2476_v53 = vpop.eup %2475  ;;  %2495 = vrcp.f32 %v756_v37  ;;  %v2041_v55 = vmul.f32 -1.442695, %v3267_v47  ;;  %2334 = vmatmul.mubr.msk.bf16.gmra.mrb[12].mxu1 %vm1060_vm1, %v996_v34 }
 0x12e   :  { %v2478_v56 = vpop.eup %2477  ;;  %2497 = vrcp.f32 %v754_v49  ;;  %v2039_v58 = vmul.f32 -1.442695, %v3271_v51  ;;  %v943_v0 = vmul.f32 %v2476_v53, %v3194_v61 }
 0x12f   :  { %v2480_v59 = vpop.eup %2479  ;;  %2499 = vpow2.f32 %v2040_v46  ;;  %v2283_v62 = vpop.f32.mrb[32].mxu0  ;;  %v941_v2 = vmul.f32 %v2478_v56, %v3197_v45 }
 0x130   :  { %v2482_v40 = vpop.eup %2481  ;;  %v944_v42 = vmul.f32 %v2480_v59, %v3201_v3  ;;  %2501 = vpow2.f32 %v2038_v50  ;;  %v3280_v1 = vadd.f32 %v2283_v62, %v3123_v38  ;;  %v414_v48 = vpop.f32.mrb[33].mxu0 }
 0x131   :  { %v2484_v13 = vpop.eup %2483  ;;  %v942_v4 = vmul.f32 %v2482_v40, %v3205_v10  ;;  %2503 = vpow2.f32 %v2041_v55  ;;  %v3285_v6 = vadd.f32 %v3123_v38, %v414_v48  ;;  %v2284_v16 = vpop.f32.mrb[34].mxu0 }
 0x132   :  { %v2486_v7 = vpop.eup %2485  ;;  %v998_v8 = vpack.c.bf16 %v944_v42, %v943_v0  ;;  %v759_v61 = vadd.f32 1.0, %v2484_v13  ;;  %2505 = vpow2.f32 %v2039_v58  ;;  %v417_v3 = vpop.f32.mrb[35].mxu0  ;;  %v3288_v17 = vadd.f32 %v2284_v16, %v3123_v38 }
 0x133   :  { %v2488_v11 = vpop.eup %2487  ;;  %v997_v14 = vpack.c.bf16 %v942_v4, %v941_v2  ;;  %v757_v15 = vadd.f32 1.0, %v2486_v7  ;;  %v2044_v10 = vmul.f32 -1.442695, %v3280_v1  ;;  %v3292_v19 = vadd.f32 %v3123_v38, %v417_v3 }
 0x134   :  { %v2490_v18 = vpop.eup %2489  ;;  %2507 = vrcp.f32 %v759_v61  ;;  %v760_v45 = vadd.f32 1.0, %v2488_v11  ;;  %v2042_v22 = vmul.f32 -1.442695, %v3285_v6  ;;  %v2045_v24 = vmul.f32 -1.442695, %v3288_v17 }
 0x135   :  { %v2492_v20 = vpop.eup %2491  ;;  %2509 = vrcp.f32 %v757_v15  ;;  %v758_v21 = vadd.f32 1.0, %v2490_v18  ;;  %2337 = vmatprep.mubr.msk.bf16.mxu1 %vm1060_vm1, %v997_v14  ;;  %v2043_v27 = vmul.f32 -1.442695, %v3292_v19 }
 0x136   :  { %v2494_v23 = vpop.eup %2493  ;;  %2511 = vrcp.f32 %v760_v45  ;;  %2338 = vmatmul.mubr.msk.bf16.gmra.mrb[16].mxu1 %vm1060_vm1, %v998_v8  ;;  %v947_v32 = vmul.f32 %v2492_v20, %v3216_v28 }
 0x137   :  { %v2496_v26 = vpop.eup %2495  ;;  %2513 = vrcp.f32 %v758_v21  ;;  %v2287_v30 = vpop.f32.mrb[36].mxu0  ;;  %v945_v35 = vmul.f32 %v2494_v23, %v3219_v57 }
 0x138   :  { %v2498_v31 = vpop.eup %2497  ;;  %v948_v54 = vmul.f32 %v2496_v26, %v3223_v36  ;;  %2515 = vpow2.f32 %v2044_v10  ;;  %v3302_v34 = vadd.f32 %v2287_v30, %v3123_v38  ;;  %v430_v60 = vpop.f32.mrb[37].mxu0 }
 0x139   :  { %v2500_v33 = vpop.eup %2499  ;;  %v946_v39 = vmul.f32 %v2498_v31, %v3227_v44  ;;  %2517 = vpow2.f32 %v2042_v22  ;;  %v3307_v41 = vadd.f32 %v3123_v38, %v430_v60  ;;  %v2288_v29 = vpop.f32.mrb[38].mxu0 }
 0x13a   :  { %v2502_v43 = vpop.eup %2501  ;;  %v1000_v37 = vpack.c.bf16 %v948_v54, %v947_v32  ;;  %v763_v28 = vadd.f32 1.0, %v2500_v33  ;;  %2519 = vpow2.f32 %v2045_v24  ;;  %v433_v36 = vpop.f32.mrb[39].mxu0  ;;  %v2048_v53 = vmul.f32 -1.442695, %v3302_v34 }
 0x13b   :  { %v2504_v46 = vpop.eup %2503  ;;  %v999_v49 = vpack.c.bf16 %v946_v39, %v945_v35  ;;  %v761_v50 = vadd.f32 1.0, %v2502_v43  ;;  %2521 = vpow2.f32 %v2043_v27  ;;  %v3311_v44 = vadd.f32 %v2288_v29, %v3123_v38 }
 0x13c   :  { %v2506_v55 = vpop.eup %2505  ;;  %2523 = vrcp.f32 %v763_v28  ;;  %v764_v57 = vadd.f32 1.0, %v2504_v46  ;;  %v3314_v56 = vadd.f32 %v3123_v38, %v433_v36  ;;  %v2046_v59 = vmul.f32 -1.442695, %v3307_v41 }
 0x13d   :  { %2525 = vrcp.f32 %v761_v50  ;;  %v762_v58 = vadd.f32 1.0, %v2506_v55  ;;  %2341 = vmatprep.mubr.msk.bf16.mxu1 %vm1060_vm1, %v999_v49  ;;  %v2049_v40 = vmul.f32 -1.442695, %v3311_v44 }
 0x13e   :  { %v2508_v62 = vpop.eup %2507  ;;  %2527 = vrcp.f32 %v764_v57  ;;  %2342 = vmatmul.mubr.msk.bf16.gmra.mrb[20].mxu1 %vm1060_vm1, %v1000_v37  ;;  %v2047_v42 = vmul.f32 -1.442695, %v3314_v56 }
 0x13f   :  { %v2510_v0 = vpop.eup %2509  ;;  %2529 = vrcp.f32 %v762_v58  ;;  %v2291_v48 = vpop.f32.mrb[40].mxu0  ;;  %v951_v2 = vmul.f32 %v2508_v62, %v3238_v63 }
 0x140   :  { %v2512_v13 = vpop.eup %2511  ;;  %2531 = vpow2.f32 %v2048_v53  ;;  %v3323_v4 = vadd.f32 %v2291_v48, %v3123_v38  ;;  %v446_v16 = vpop.f32.mrb[41].mxu0  ;;  %v949_v8 = vmul.f32 %v2510_v0, %v3241_v5 }
 0x141   :  { %v2514_v7 = vpop.eup %2513  ;;  %v952_v61 = vmul.f32 %v2512_v13, %v3244_v9  ;;  %2533 = vpow2.f32 %v2046_v59  ;;  %v3328_v3 = vadd.f32 %v3123_v38, %v446_v16  ;;  %v2292_v11 = vpop.f32.mrb[42].mxu0 }
 0x142   :  { %v2516_v14 = vpop.eup %2515  ;;  %v950_v15 = vmul.f32 %v2514_v7, %v3248_v12  ;;  %2535 = vpow2.f32 %v2049_v40  ;;  %v2052_v63 = vmul.f32 -1.442695, %v3323_v4  ;;  %v3333_v18 = vadd.f32 %v2292_v11, %v3123_v38  ;;  %v449_v45 = vpop.f32.mrb[43].mxu0 }
 0x143   :  { %v2518_v10 = vpop.eup %2517  ;;  %v1002_v20 = vpack.c.bf16 %v952_v61, %v951_v2  ;;  %v767_v5 = vadd.f32 1.0, %v2516_v14  ;;  %2537 = vpow2.f32 %v2047_v42  ;;  %v2050_v12 = vmul.f32 -1.442695, %v3328_v3 }
 0x144   :  { %v2520_v9 = vpop.eup %2519  ;;  %v1001_v21 = vpack.c.bf16 %v950_v15, %v949_v8  ;;  %v765_v22 = vadd.f32 1.0, %v2518_v10  ;;  %2539 = vpow2.f32 %v2052_v63  ;;  %v3337_v26 = vadd.f32 %v3123_v38, %v449_v45 }
 0x145   :  { %v2522_v23 = vpop.eup %2521  ;;  %2541 = vrcp.f32 %v767_v5  ;;  %v768_v24 = vadd.f32 1.0, %v2520_v9  ;;  %v2053_v31 = vmul.f32 -1.442695, %v3333_v18 }
 0x146   :  { %v2524_v27 = vpop.eup %2523  ;;  %2543 = vrcp.f32 %v765_v22  ;;  %v766_v30 = vadd.f32 1.0, %v2522_v23  ;;  %2345 = vmatprep.mubr.msk.bf16.mxu1 %vm1060_vm1, %v1001_v21  ;;  %v2051_v54 = vmul.f32 -1.442695, %v3337_v26 }
 0x147   :  { %v2526_v32 = vpop.eup %2525  ;;  %2545 = vrcp.f32 %v768_v24  ;;  %2346 = vmatmul.mubr.msk.bf16.gmra.mrb[24].mxu1 %vm1060_vm1, %v1002_v20  ;;  %v2295_v60 = vpop.f32.mrb[44].mxu0  ;;  %v955_v43 = vmul.f32 %v2524_v27, %v3260_v52 }
 0x148   :  { %v2528_v33 = vpop.eup %2527  ;;  %2547 = vrcp.f32 %v766_v30  ;;  %v3344_v35 = vadd.f32 %v2295_v60, %v3123_v38  ;;  %v462_v39 = vpop.f32.mrb[45].mxu0  ;;  %v953_v37 = vmul.f32 %v2526_v32, %v3263_v25 }
 0x149   :  { %v2530_v29 = vpop.eup %2529  ;;  %v956_v28 = vmul.f32 %v2528_v33, %v3267_v47  ;;  %2549 = vpow2.f32 %v2050_v12  ;;  %v2296_v36 = vpop.f32.mrb[46].mxu0  ;;  %v3352_v53 = vadd.f32 %v3123_v38, %v462_v39 }
 0x14a   :  { %v2532_v46 = vpop.eup %2531  ;;  %v954_v49 = vmul.f32 %v2530_v29, %v3271_v51  ;;  %2551 = vpow2.f32 %v2053_v31  ;;  %v2056_v50 = vmul.f32 -1.442695, %v3344_v35  ;;  %v465_v55 = vpop.f32.mrb[47].mxu0  ;;  %v3355_v52 = vadd.f32 %v2296_v36, %v3123_v38 }
 0x14b   :  { %v2534_v57 = vpop.eup %2533  ;;  %v1004_v58 = vpack.c.bf16 %v956_v28, %v955_v43  ;;  %v771_v59 = vadd.f32 1.0, %v2532_v46  ;;  %2553 = vpow2.f32 %v2051_v54  ;;  %v3358_v0 = vadd.f32 %v3123_v38, %v465_v55 }
 0x14c   :  { %v2536_v25 = vpop.eup %2535  ;;  %v1003_v47 = vpack.c.bf16 %v954_v49, %v953_v37  ;;  %v769_v62 = vadd.f32 1.0, %v2534_v57  ;;  %2555 = vpow2.f32 %v2056_v50  ;;  %v2054_v13 = vmul.f32 -1.442695, %v3352_v53 }
 0x14d   :  { %v2538_v40 = vpop.eup %2537  ;;  %2557 = vrcp.f32 %v771_v59  ;;  %v772_v51 = vadd.f32 1.0, %v2536_v25  ;;  %v2057_v7 = vmul.f32 -1.442695, %v3355_v52  ;;  %v2055_v11 = vmul.f32 -1.442695, %v3358_v0 }
 0x14e   :  { %v2540_v42 = vpop.eup %2539  ;;  %2559 = vrcp.f32 %v769_v62  ;;  %v770_v48 = vadd.f32 1.0, %v2538_v40  ;;  %2349 = vmatprep.mubr.msk.bf16.mxu1 %vm1060_vm1, %v1003_v47 }
 0x14f   :  { %v2542_v2 = vpop.eup %2541  ;;  %2561 = vrcp.f32 %v772_v51  ;;  %v775_v16 = vadd.f32 1.0, %v2540_v42  ;;  %2350 = vmatmul.mubr.msk.bf16.gmra.mrb[28].mxu1 %vm1060_vm1, %v1004_v58  ;;  %v2299_v8 = vpop.f32.mrb[48].mxu0 }
 0x150   :  { %v2544_v61 = vpop.eup %2543  ;;  %2563 = vrcp.f32 %v770_v48  ;;  %v3366_v14 = vadd.f32 %v2299_v8, %v3123_v38  ;;  %v478_v15 = vpop.f32.mrb[49].mxu0  ;;  %v959_v45 = vmul.f32 %v2542_v2, %v3280_v1 }
 0x151   :  { %v2546_v63 = vpop.eup %2545  ;;  %2565 = vrcp.f32 %v775_v16  ;;  %v2300_v10 = vpop.f32.mrb[50].mxu0  ;;  %v3372_v21 = vadd.f32 %v3123_v38, %v478_v15  ;;  %v957_v24 = vmul.f32 %v2544_v61, %v3285_v6 }
 0x152   :  { %v2548_v20 = vpop.eup %2547  ;;  %v960_v5 = vmul.f32 %v2546_v63, %v3288_v17  ;;  %2567 = vpow2.f32 %v2054_v13  ;;  %v2060_v9 = vmul.f32 -1.442695, %v3366_v14  ;;  %v481_v22 = vpop.f32.mrb[51].mxu0  ;;  %v3377_v1 = vadd.f32 %v2300_v10, %v3123_v38 }
 0x153   :  { %v2550_v23 = vpop.eup %2549  ;;  %v958_v12 = vmul.f32 %v2548_v20, %v3292_v19  ;;  %2569 = vpow2.f32 %v2057_v7  ;;  %v3380_v17 = vadd.f32 %v3123_v38, %v481_v22  ;;  %v2058_v19 = vmul.f32 -1.442695, %v3372_v21 }
 0x154   :  { %v2552_v27 = vpop.eup %2551  ;;  %v1006_v30 = vpack.c.bf16 %v960_v5, %v959_v45  ;;  %v773_v31 = vadd.f32 1.0, %v2550_v23  ;;  %2571 = vpow2.f32 %v2055_v11  ;;  %v2061_v43 = vmul.f32 -1.442695, %v3377_v1 }
 0x155   :  { %v2554_v32 = vpop.eup %2553  ;;  %v1005_v54 = vpack.c.bf16 %v958_v12, %v957_v24  ;;  %v776_v60 = vadd.f32 1.0, %v2552_v27  ;;  %2573 = vpow2.f32 %v2060_v9  ;;  %v2059_v36 = vmul.f32 -1.442695, %v3380_v17 }
 0x156   :  { %v2556_v33 = vpop.eup %2555  ;;  %2575 = vrcp.f32 %v773_v31  ;;  %v774_v6 = vadd.f32 1.0, %v2554_v32 }
 0x157   :  { %v2558_v39 = vpop.eup %2557  ;;  %2577 = vrcp.f32 %v776_v60  ;;  %v779_v29 = vadd.f32 1.0, %v2556_v33  ;;  %2353 = vmatprep.mubr.msk.bf16.mxu1 %vm1060_vm1, %v1005_v54  ;;  %v2303_v37 = vpop.f32.mrb[52].mxu0 }
 0x158   :  { %v2560_v28 = vpop.eup %2559  ;;  %2579 = vrcp.f32 %v774_v6  ;;  %2354 = vmatmul.mubr.msk.bf16.gmra.mrb[32].mxu1 %vm1060_vm1, %v1006_v30  ;;  %v3388_v46 = vadd.f32 %v2303_v37, %v3123_v38  ;;  %v494_v49 = vpop.f32.mrb[53].mxu0  ;;  %v963_v55 = vmul.f32 %v2558_v39, %v3302_v34 }
 0x159   :  { %v2562_v50 = vpop.eup %2561  ;;  %2581 = vrcp.f32 %v779_v29  ;;  %v3392_v57 = vadd.f32 %v3123_v38, %v494_v49  ;;  %v2304_v58 = vpop.f32.mrb[54].mxu0  ;;  %v961_v25 = vmul.f32 %v2560_v28, %v3307_v41 }
 0x15a   :  { %v2564_v59 = vpop.eup %2563  ;;  %v964_v47 = vmul.f32 %v2562_v50, %v3311_v44  ;;  %2583 = vpow2.f32 %v2058_v19  ;;  %v2064_v62 = vmul.f32 -1.442695, %v3388_v46  ;;  %v497_v40 = vpop.f32.mrb[55].mxu0  ;;  %v3400_v48 = vadd.f32 %v2304_v58, %v3123_v38 }
 0x15b   :  { %v2566_v51 = vpop.eup %2565  ;;  %v962_v42 = vmul.f32 %v2564_v59, %v3314_v56  ;;  %2585 = vpow2.f32 %v2061_v43  ;;  %v2062_v34 = vmul.f32 -1.442695, %v3392_v57  ;;  %v3403_v41 = vadd.f32 %v3123_v38, %v497_v40 }
 0x15c   :  { %v2568_v13 = vpop.eup %2567  ;;  %v1008_v2 = vpack.c.bf16 %v964_v47, %v963_v55  ;;  %2587 = vpow2.f32 %v2059_v36  ;;  %v2065_v15 = vmul.f32 -1.442695, %v3400_v48  ;;  %v967_v27 = vmul.f32 %v2566_v51, %v3323_v4  ;;  %v2907_v4 = vld [vmem:[%s3620_s2] ss:$0 sm:$0xff] }
 0x15d   :  { %v2570_v44 = vpop.eup %2569  ;;  %v1007_v16 = vpack.c.bf16 %v962_v42, %v961_v25  ;;  %v777_v7 = vadd.f32 1.0, %v2568_v13  ;;  %2589 = vpow2.f32 %v2064_v62  ;;  %v2063_v20 = vmul.f32 -1.442695, %v3403_v41 }
 0x15e   :  { %v2572_v8 = vpop.eup %2571  ;;  %v780_v61 = vadd.f32 1.0, %v2570_v44  ;;  %2591 = vpow2.f32 %v2062_v34 }
 0x15f   :  { %v2574_v56 = vpop.eup %2573  ;;  %2593 = vrcp.f32 %v777_v7  ;;  %v778_v11 = vadd.f32 1.0, %v2572_v8  ;;  %2357 = vmatprep.mubr.msk.bf16.mxu1 %vm1060_vm1, %v1007_v16  ;;  %v2307_v63 = vpop.f32.mrb[56].mxu0 }
 0x160   :  { %v2576_v45 = vpop.eup %2575  ;;  %2595 = vrcp.f32 %v780_v61  ;;  %v783_v10 = vadd.f32 1.0, %v2574_v56  ;;  %2358 = vmatmul.mubr.msk.bf16.gmra.mrb[36].mxu1 %vm1060_vm1, %v1008_v2  ;;  %v3410_v5 = vadd.f32 %v2307_v63, %v3123_v38  ;;  %v510_v9 = vpop.f32.mrb[57].mxu0 }
 0x161   :  { %v2578_v22 = vpop.eup %2577  ;;  %2597 = vrcp.f32 %v778_v11  ;;  %v3413_v23 = vadd.f32 %v3123_v38, %v510_v9  ;;  %v2308_v24 = vpop.f32.mrb[58].mxu0  ;;  %v965_v60 = vmul.f32 %v2576_v45, %v3328_v3 }
 0x162   :  { %v2580_v12 = vpop.eup %2579  ;;  %v968_v30 = vmul.f32 %v2578_v22, %v3333_v18  ;;  %2599 = vrcp.f32 %v783_v10  ;;  %v2068_v31 = vmul.f32 -1.442695, %v3410_v5  ;;  %v513_v32 = vpop.f32.mrb[59].mxu0  ;;  %v3424_v18 = vadd.f32 %v2907_v4, %v2308_v24 }
 0x163   :  { %v2582_v54 = vpop.eup %2581  ;;  %v966_v33 = vmul.f32 %v2580_v12, %v3337_v26  ;;  %2601 = vpow2.f32 %v2065_v15  ;;  %v2066_v6 = vmul.f32 -1.442695, %v3413_v23  ;;  %v3426_v37 = vadd.f32 %v2907_v4, %v513_v32 }
 0x164   :  { %v2584_v38 = vpop.eup %2583  ;;  %v1010_v19 = vpack.c.bf16 %v968_v30, %v967_v27  ;;  %2603 = vpow2.f32 %v2063_v20  ;;  %v2069_v58 = vmul.f32 -1.442695, %v3424_v18  ;;  %v971_v16 = vmul.f32 %v2582_v54, %v3344_v35 }
 0x165   :  { %v2586_v39 = vpop.eup %2585  ;;  %v1009_v29 = vpack.c.bf16 %v966_v33, %v965_v60  ;;  %v781_v43 = vadd.f32 1.0, %v2584_v38  ;;  %2605 = vpow2.f32 %v2068_v31  ;;  %v2067_v40 = vmul.f32 -1.442695, %v3426_v37 }
 0x166   :  { %v2588_v3 = vpop.eup %2587  ;;  %v784_v26 = vadd.f32 1.0, %v2586_v39  ;;  %2607 = vpow2.f32 %v2066_v6 }
 0x167   :  { %v2590_v28 = vpop.eup %2589  ;;  %2609 = vrcp.f32 %v781_v43  ;;  %v782_v36 = vadd.f32 1.0, %v2588_v3  ;;  %2361 = vmatprep.mubr.msk.bf16.mxu1 %vm1060_vm1, %v1009_v29  ;;  %v2311_v49 = vpop.f32.mrb[60].mxu0 }
 0x168   :  { %v2592_v50 = vpop.eup %2591  ;;  %2611 = vrcp.f32 %v784_v26  ;;  %v787_v55 = vadd.f32 1.0, %v2590_v28  ;;  %2362 = vmatmul.mubr.msk.bf16.gmra.mrb[40].mxu1 %vm1060_vm1, %v1010_v19  ;;  %v3431_v59 = vadd.f32 %v2907_v4, %v2311_v49  ;;  %v526_v25 = vpop.f32.mrb[61].mxu0 }
 0x169   :  { %v2594_v47 = vpop.eup %2593  ;;  %2613 = vrcp.f32 %v782_v36  ;;  %v785_v62 = vadd.f32 1.0, %v2592_v50  ;;  %v3434_v51 = vadd.f32 %v2907_v4, %v526_v25  ;;  %v2312_v42 = vpop.f32.mrb[62].mxu0 }
 0x16a   :  { %v2596_v34 = vpop.eup %2595  ;;  %2615 = vrcp.f32 %v787_v55  ;;  %v2072_v13 = vmul.f32 -1.442695, %v3431_v59  ;;  %v529_v2 = vpop.f32.mrb[63].mxu0  ;;  %v969_v56 = vmul.f32 %v2594_v47, %v3352_v53  ;;  %v3442_v15 = vadd.f32 %v2907_v4, %v2312_v42 }
 0x16b   :  { %v2598_v44 = vpop.eup %2597  ;;  %v972_v7 = vmul.f32 %v2596_v34, %v3355_v52  ;;  %2617 = vrcp.f32 %v785_v62  ;;  %v2070_v8 = vmul.f32 -1.442695, %v3434_v51  ;;  %v3444_v10 = vadd.f32 %v2907_v4, %v529_v2 }
 0x16c   :  { %v2600_v61 = vpop.eup %2599  ;;  %v970_v11 = vmul.f32 %v2598_v44, %v3358_v0  ;;  %2619 = vpow2.f32 %v2069_v58  ;;  %v2073_v53 = vmul.f32 -1.442695, %v3442_v15 }
 0x16d   :  { %v2602_v63 = vpop.eup %2601  ;;  %v1012_v45 = vpack.c.bf16 %v972_v7, %v971_v16  ;;  %2621 = vpow2.f32 %v2067_v40  ;;  %v2071_v12 = vmul.f32 -1.442695, %v3444_v10  ;;  %v975_v31 = vmul.f32 %v2600_v61, %v3366_v14 }
 0x16e   :  { %v2604_v20 = vpop.eup %2603  ;;  %v1011_v35 = vpack.c.bf16 %v970_v11, %v969_v56  ;;  %v788_v9 = vadd.f32 1.0, %v2602_v63  ;;  %2623 = vpow2.f32 %v2072_v13 }
 0x16f   :  { %v2606_v52 = vpop.eup %2605  ;;  %v786_v22 = vadd.f32 1.0, %v2604_v20  ;;  %2625 = vpow2.f32 %v2070_v8 }
 0x170   :  { %v2608_v24 = vpop.eup %2607  ;;  %2627 = vrcp.f32 %v788_v9  ;;  %2365 = vmatprep.mubr.msk.bf16.mxu1 %vm1060_vm1, %v1011_v35  ;;  %v791_v54 = vadd.f32 1.0, %v2606_v52  ;;  %v3477_v35 = vld [vmem:[%s3622_s4] ss:$0 sm:$0xff] }
 0x171   :  { %v2610_v0 = vpop.eup %2609  ;;  %2629 = vrcp.f32 %v786_v22  ;;  %2366 = vmatmul.mubr.msk.bf16.gmra.mrb[44].mxu1 %vm1060_vm1, %v1012_v45  ;;  %v789_v38 = vadd.f32 1.0, %v2608_v24 }
 0x172   :  { %v2612_v27 = vpop.eup %2611  ;;  %v973_v33 = vmul.f32 %v2610_v0, %v3372_v21  ;;  %2631 = vpow2.f32 %v2073_v53 }
 0x173   :  { %v2614_v30 = vpop.eup %2613  ;;  %v976_v32 = vmul.f32 %v2612_v27, %v3377_v1  ;;  %2633 = vpow2.f32 %v2071_v12 }
 0x174   :  { %v2616_v60 = vpop.eup %2615  ;;  %v974_v6 = vmul.f32 %v2614_v30, %v3380_v17  ;;  %2635 = vrcp.f32 %v791_v54 }
 0x175   :  { %v2618_v19 = vpop.eup %2617  ;;  %v1014_v4 = vpack.c.bf16 %v976_v32, %v975_v31  ;;  %2637 = vrcp.f32 %v789_v38  ;;  %v979_v28 = vmul.f32 %v2616_v60, %v3388_v46 }
 0x176   :  { %v2620_v39 = vpop.eup %2619  ;;  %v1013_v29 = vpack.c.bf16 %v974_v6, %v973_v33  ;;  %v977_v50 = vmul.f32 %v2618_v19, %v3392_v57 }
 0x177   :  { %v2622_v43 = vpop.eup %2621  ;;  %v792_v3 = vadd.f32 1.0, %v2620_v39 }
 0x178   :  { %v2624_v26 = vpop.eup %2623  ;;  %v790_v14 = vadd.f32 1.0, %v2622_v43  ;;  %2369 = vmatprep.mubr.msk.bf16.mxu1 %vm1060_vm1, %v1013_v29 }
 0x179   :  { %v2626_v1 = vpop.eup %2625  ;;  %2639 = vrcp.f32 %v792_v3  ;;  %2370 = vmatmul.mubr.msk.bf16.gmra.mrb[48].mxu1 %vm1060_vm1, %v1014_v4  ;;  %v795_v49 = vadd.f32 1.0, %v2624_v26 }
 0x17a   :  { %v2628_v21 = vpop.eup %2627  ;;  %2641 = vrcp.f32 %v790_v14  ;;  %v793_v58 = vadd.f32 1.0, %v2626_v1 }
 0x17b   :  { %v2630_v17 = vpop.eup %2629  ;;  %v980_v36 = vmul.f32 %v2628_v21, %v3400_v48  ;;  %2643 = vrcp.f32 %v795_v49 }
 0x17c   :  { %v978_v55 = vmul.f32 %v2630_v17, %v3403_v41  ;;  %v2632_v47 = vpop.eup %2631  ;;  %2645 = vrcp.f32 %v793_v58 }
 0x17d   :  { %v1016_v25 = vpack.c.bf16 %v980_v36, %v979_v28  ;;  %v2634_v40 = vpop.eup %2633  ;;  %v796_v42 = vadd.f32 1.0, %v2632_v47 }
 0x17e   :  { %v1015_v62 = vpack.c.bf16 %v978_v55, %v977_v50  ;;  %v794_v34 = vadd.f32 1.0, %v2634_v40  ;;  %v2636_v13 = vpop.eup %2635 }
 0x17f   :  { %2647 = vrcp.f32 %v796_v42  ;;  %v2638_v46 = vpop.eup %2637  ;;  %v983_v41 = vmul.f32 %v2636_v13, %v3410_v5 }
 0x180   :  { %2373 = vmatprep.mubr.msk.bf16.mxu1 %vm1060_vm1, %v1015_v62  ;;  %2649 = vrcp.f32 %v794_v34  ;;  %v981_v44 = vmul.f32 %v2638_v46, %v3413_v23 }
 0x181   :  { %2374 = vmatmul.mubr.msk.bf16.gmra.mrb[52].mxu1 %vm1060_vm1, %v1016_v25 }
 0x183   :  { %v2640_v57 = vpop.eup %2639 }
 0x184   :  { %v2642_v48 = vpop.eup %2641  ;;  %v984_v2 = vmul.f32 %v2640_v57, %v3424_v18 }
 0x185   :  { %v982_v16 = vmul.f32 %v2642_v48, %v3426_v37  ;;  %v2644_v61 = vpop.eup %2643 }
 0x186   :  { %v1018_v7 = vpack.c.bf16 %v984_v2, %v983_v41  ;;  %v2646_v56 = vpop.eup %2645  ;;  %v987_v45 = vmul.f32 %v2644_v61, %v3431_v59 }
 0x187   :  { %v1017_v8 = vpack.c.bf16 %v982_v16, %v981_v44  ;;  %v985_v18 = vmul.f32 %v2646_v56, %v3434_v51 }
 0x189   :  { %2377 = vmatprep.mubr.msk.bf16.mxu1 %vm1060_vm1, %v1017_v8  ;;  %v2648_v11 = vpop.eup %2647 }
 0x18a   :  { %2378 = vmatmul.mubr.msk.bf16.gmra.mrb[56].mxu1 %vm1060_vm1, %v1018_v7  ;;  %v2650_v63 = vpop.eup %2649  ;;  %v988_v5 = vmul.f32 %v2648_v11, %v3442_v15 }
 0x18b   :  { %v986_v23 = vmul.f32 %v2650_v63, %v3444_v10 }
 0x18c   :  { %v1020_v20 = vpack.c.bf16 %v988_v5, %v987_v45 }
 0x18d   :  { %v1019_v37 = vpack.c.bf16 %v986_v23, %v985_v18 }
 0x18f   :  { %2381 = vmatprep.mubr.msk.bf16.mxu1 %vm1060_vm1, %v1019_v37  ;;  %v2908_v37 = vld [vmem:[#allocation2 + $0x10] sm:$0xff] }
 0x192   :  { %2382 = vmatmul.mubr.msk.bf16.gmra.mrb[60].mxu1 %vm1060_vm1, %v1020_v20 }
 0x1e7   :  { %v2323_v9 = vpop.f32.mrb[0].mxu1 }
 0x1e8   :  { %v1200_v59 = vadd.f32 %v2323_v9, %v3477_v35  ;;  %v1191_v52 = vpop.f32.mrb[1].mxu1 }
 0x1e9   :  { %v1192_v15 = vadd.f32 %v3477_v35, %v1191_v52  ;;  %v2324_v51 = vpop.f32.mrb[2].mxu1 }
 0x1ea   :  { %v2113_v22 = vmul.f32 -1.442695, %v1200_v59  ;;  %v1203_v10 = vadd.f32 %v2324_v51, %v3477_v35  ;;  %v1194_v24 = vpop.f32.mrb[3].mxu1  ;;  %v2909_v51 = vld [vmem:[#allocation2] sm:$0xff] }
 0x1eb   :  { %v2111_v53 = vmul.f32 -1.442695, %v1192_v15  ;;  %v1195_v0 = vadd.f32 %v3477_v35, %v1194_v24 }
 0x1ec   :  { %2651 = vpow2.f32 %v2113_v22  ;;  %v2114_v12 = vmul.f32 -1.442695, %v1203_v10 }
 0x1ed   :  { %2653 = vpow2.f32 %v2111_v53  ;;  %v2112_v27 = vmul.f32 -1.442695, %v1195_v0  ;;  %v2910_v53 = vld [vmem:[#allocation2 + $0x18] sm:$0xff] }
 0x1ee   :  { %2655 = vpow2.f32 %v2114_v12 }
 0x1ef   :  { %2657 = vpow2.f32 %v2112_v27  ;;  %v2327_v30 = vpop.f32.mrb[4].mxu1 }
 0x1f0   :  { %v1216_v31 = vadd.f32 %v2327_v30, %v3477_v35  ;;  %v1207_v32 = vpop.f32.mrb[5].mxu1  ;;  %v2911_v30 = vld [vmem:[#allocation2 + $0x8] sm:$0xff] }
 0x1f1   :  { %v1208_v54 = vadd.f32 %v3477_v35, %v1207_v32  ;;  %v2328_v60 = vpop.f32.mrb[6].mxu1 }
 0x1f2   :  { %v2117_v33 = vmul.f32 -1.442695, %v1216_v31  ;;  %v1219_v6 = vadd.f32 %v2328_v60, %v3477_v35  ;;  %v1210_v38 = vpop.f32.mrb[7].mxu1 }
 0x1f3   :  { %v2115_v19 = vmul.f32 -1.442695, %v1208_v54  ;;  %v1211_v4 = vadd.f32 %v3477_v35, %v1210_v38 }
 0x1f4   :  { %2659 = vpow2.f32 %v2117_v33  ;;  %v2118_v39 = vmul.f32 -1.442695, %v1219_v6 }
 0x1f5   :  { %2661 = vpow2.f32 %v2115_v19  ;;  %v2116_v29 = vmul.f32 -1.442695, %v1211_v4 }
 0x1f6   :  { %v2652_v43 = vpop.eup %2651  ;;  %2663 = vpow2.f32 %v2118_v39 }
 0x1f7   :  { %v2654_v3 = vpop.eup %2653  ;;  %v1640_v26 = vadd.f32 1.0, %v2652_v43  ;;  %2665 = vpow2.f32 %v2116_v29 }
 0x1f8   :  { %v2656_v14 = vpop.eup %2655  ;;  %v1638_v1 = vadd.f32 1.0, %v2654_v3  ;;  %v2331_v21 = vpop.f32.mrb[8].mxu1 }
 0x1f9   :  { %v2658_v17 = vpop.eup %2657  ;;  %2667 = vrcp.f32 %v1640_v26  ;;  %v1641_v28 = vadd.f32 1.0, %v2656_v14  ;;  %v1232_v36 = vadd.f32 %v2331_v21, %v3477_v35  ;;  %v1223_v49 = vpop.f32.mrb[9].mxu1 }
 0x1fa   :  { %2669 = vrcp.f32 %v1638_v1  ;;  %v1639_v50 = vadd.f32 1.0, %v2658_v17  ;;  %v1224_v55 = vadd.f32 %v3477_v35, %v1223_v49  ;;  %v2332_v58 = vpop.f32.mrb[10].mxu1  ;;  %v2912_v1 = vld [vmem:[#allocation2 + $0x30] sm:$0xff] }
 0x1fb   :  { %2671 = vrcp.f32 %v1641_v28  ;;  %v2121_v25 = vmul.f32 -1.442695, %v1232_v36  ;;  %v1235_v47 = vadd.f32 %v2332_v58, %v3477_v35  ;;  %v1226_v62 = vpop.f32.mrb[11].mxu1 }
 0x1fc   :  { %2673 = vrcp.f32 %v1639_v50  ;;  %v2119_v40 = vmul.f32 -1.442695, %v1224_v55  ;;  %v1227_v42 = vadd.f32 %v3477_v35, %v1226_v62  ;;  %v2913_v50 = vld [vmem:[#allocation2 + $0x20] sm:$0xff]  ;;  %v2914_v62 = vld [vmem:[#allocation2 + $0x38] sm:$0xff] }
 0x1fd   :  { %2675 = vpow2.f32 %v2121_v25  ;;  %v2122_v34 = vmul.f32 -1.442695, %v1235_v47 }
 0x1fe   :  { %v2660_v13 = vpop.eup %2659  ;;  %2677 = vpow2.f32 %v2119_v40  ;;  %v2120_v46 = vmul.f32 -1.442695, %v1227_v42 }
 0x1ff   :  { %v2662_v57 = vpop.eup %2661  ;;  %v1644_v48 = vadd.f32 1.0, %v2660_v13  ;;  %2679 = vpow2.f32 %v2122_v34  ;;  %v2915_v13 = vld [vmem:[#allocation2 + $0x28] sm:$0xff] }
 0x200   :  { %v2664_v41 = vpop.eup %2663  ;;  %v1642_v2 = vadd.f32 1.0, %v2662_v57  ;;  %2681 = vpow2.f32 %v2120_v46  ;;  %v2335_v44 = vpop.f32.mrb[12].mxu1 }
 0x201   :  { %v2666_v16 = vpop.eup %2665  ;;  %2683 = vrcp.f32 %v1644_v48  ;;  %v1645_v7 = vadd.f32 1.0, %v2664_v41  ;;  %v1248_v8 = vadd.f32 %v2335_v44, %v3477_v35  ;;  %v1239_v61 = vpop.f32.mrb[13].mxu1 }
 0x202   :  { %2685 = vrcp.f32 %v1642_v2  ;;  %v1643_v56 = vadd.f32 1.0, %v2666_v16  ;;  %v1240_v11 = vadd.f32 %v3477_v35, %v1239_v61  ;;  %v2336_v63 = vpop.f32.mrb[14].mxu1 }
 0x203   :  { %v2668_v45 = vpop.eup %2667  ;;  %2687 = vrcp.f32 %v1645_v7  ;;  %v2125_v5 = vmul.f32 -1.442695, %v1248_v8  ;;  %v1251_v18 = vadd.f32 %v2336_v63, %v3477_v35  ;;  %v1242_v23 = vpop.f32.mrb[15].mxu1 }
 0x204   :  { %v2670_v20 = vpop.eup %2669  ;;  %v1832_v9 = vmul.f32 %v2908_v37, %v2668_v45  ;;  %2689 = vrcp.f32 %v1643_v56  ;;  %v2123_v59 = vmul.f32 -1.442695, %v1240_v11  ;;  %v1243_v52 = vadd.f32 %v3477_v35, %v1242_v23 }
 0x205   :  { %v2672_v15 = vpop.eup %2671  ;;  %v1830_v22 = vmul.f32 %v2909_v51, %v2670_v20  ;;  %2691 = vpow2.f32 %v2125_v5  ;;  %v2126_v10 = vmul.f32 -1.442695, %v1251_v18 }
 0x206   :  { %v2674_v24 = vpop.eup %2673  ;;  %1896 = vst.msk [vmem:[#allocation5 + $0x10] sm:$0xff] %vm155_vm0, %v1832_v9  ;;  %v1833_v0 = vmul.f32 %v2910_v53, %v2672_v15  ;;  %2693 = vpow2.f32 %v2123_v59  ;;  %v2124_v12 = vmul.f32 -1.442695, %v1243_v52  ;;  %v2916_v9 = vld [vmem:[#allocation2 + $0x50] sm:$0xff] }
 0x207   :  { %v2676_v27 = vpop.eup %2675  ;;  %1894 = vst.msk [vmem:[#allocation5] sm:$0xff] %vm155_vm0, %v1830_v22  ;;  %v1831_v31 = vmul.f32 %v2911_v30, %v2674_v24  ;;  %2695 = vpow2.f32 %v2126_v10  ;;  %v2917_v22 = vld [vmem:[#allocation2 + $0x40] sm:$0xff] }
 0x208   :  { %v2678_v32 = vpop.eup %2677  ;;  %1897 = vst.msk [vmem:[#allocation5 + $0x18] sm:$0xff] %vm155_vm0, %v1833_v0  ;;  %v1648_v54 = vadd.f32 1.0, %v2676_v27  ;;  %2697 = vpow2.f32 %v2124_v12  ;;  %v2918_v0 = vld [vmem:[#allocation2 + $0x58] sm:$0xff] }
 0x209   :  { %v2680_v60 = vpop.eup %2679  ;;  %1895 = vst.msk [vmem:[#allocation5 + $0x8] sm:$0xff] %vm155_vm0, %v1831_v31  ;;  %v1646_v33 = vadd.f32 1.0, %v2678_v32  ;;  %v2339_v6 = vpop.f32.mrb[16].mxu1  ;;  %v2919_v31 = vld [vmem:[#allocation2 + $0x48] sm:$0xff] }
 0x20a   :  { %v2682_v38 = vpop.eup %2681  ;;  %2699 = vrcp.f32 %v1648_v54  ;;  %v1649_v19 = vadd.f32 1.0, %v2680_v60  ;;  %v1264_v4 = vadd.f32 %v2339_v6, %v3477_v35  ;;  %v1255_v39 = vpop.f32.mrb[17].mxu1 }
 0x20b   :  { %v2684_v29 = vpop.eup %2683  ;;  %2701 = vrcp.f32 %v1646_v33  ;;  %v1647_v43 = vadd.f32 1.0, %v2682_v38  ;;  %v1256_v3 = vadd.f32 %v3477_v35, %v1255_v39  ;;  %v2340_v26 = vpop.f32.mrb[18].mxu1 }
 0x20c   :  { %v2686_v14 = vpop.eup %2685  ;;  %v1836_v21 = vmul.f32 %v2912_v1, %v2684_v29  ;;  %2703 = vrcp.f32 %v1649_v19  ;;  %v2129_v17 = vmul.f32 -1.442695, %v1264_v4  ;;  %v1267_v28 = vadd.f32 %v2340_v26, %v3477_v35  ;;  %v1258_v36 = vpop.f32.mrb[19].mxu1 }
 0x20d   :  { %v2688_v49 = vpop.eup %2687  ;;  %v1834_v55 = vmul.f32 %v2913_v50, %v2686_v14  ;;  %2705 = vrcp.f32 %v1647_v43  ;;  %v2127_v58 = vmul.f32 -1.442695, %v1256_v3  ;;  %v1259_v25 = vadd.f32 %v3477_v35, %v1258_v36 }
 0x20e   :  { %v2690_v47 = vpop.eup %2689  ;;  %1900 = vst.msk [vmem:[#allocation5 + $0x30] sm:$0xff] %vm155_vm0, %v1836_v21  ;;  %v1837_v40 = vmul.f32 %v2914_v62, %v2688_v49  ;;  %2707 = vpow2.f32 %v2129_v17  ;;  %v2130_v42 = vmul.f32 -1.442695, %v1267_v28  ;;  %v2920_v21 = vld [vmem:[#allocation2 + $0x70] sm:$0xff] }
 0x20f   :  { %v2692_v34 = vpop.eup %2691  ;;  %1898 = vst.msk [vmem:[#allocation5 + $0x20] sm:$0xff] %vm155_vm0, %v1834_v55  ;;  %v1835_v46 = vmul.f32 %v2915_v13, %v2690_v47  ;;  %2709 = vpow2.f32 %v2127_v58  ;;  %v2128_v57 = vmul.f32 -1.442695, %v1259_v25  ;;  %v2921_v55 = vld [vmem:[#allocation2 + $0x60] sm:$0xff] }
 0x210   :  { %v2694_v48 = vpop.eup %2693  ;;  %1901 = vst.msk [vmem:[#allocation5 + $0x38] sm:$0xff] %vm155_vm0, %v1837_v40  ;;  %v1652_v41 = vadd.f32 1.0, %v2692_v34  ;;  %2711 = vpow2.f32 %v2130_v42  ;;  %v2922_v40 = vld [vmem:[#allocation2 + $0x78] sm:$0xff] }
 0x211   :  { %v2696_v2 = vpop.eup %2695  ;;  %1899 = vst.msk [vmem:[#allocation5 + $0x28] sm:$0xff] %vm155_vm0, %v1835_v46  ;;  %v1650_v44 = vadd.f32 1.0, %v2694_v48  ;;  %2713 = vpow2.f32 %v2128_v57  ;;  %v2343_v16 = vpop.f32.mrb[20].mxu1  ;;  %v2923_v46 = vld [vmem:[#allocation2 + $0x68] sm:$0xff] }
 0x212   :  { %v2698_v7 = vpop.eup %2697  ;;  %2715 = vrcp.f32 %v1652_v41  ;;  %v1653_v8 = vadd.f32 1.0, %v2696_v2  ;;  %v1280_v61 = vadd.f32 %v2343_v16, %v3477_v35  ;;  %v1271_v56 = vpop.f32.mrb[21].mxu1 }
 0x213   :  { %2717 = vrcp.f32 %v1650_v44  ;;  %v1651_v11 = vadd.f32 1.0, %v2698_v7  ;;  %v1272_v63 = vadd.f32 %v3477_v35, %v1271_v56  ;;  %v2344_v45 = vpop.f32.mrb[22].mxu1 }
 0x214   :  { %v2700_v5 = vpop.eup %2699  ;;  %2719 = vrcp.f32 %v1653_v8  ;;  %v2133_v18 = vmul.f32 -1.442695, %v1280_v61  ;;  %v1283_v23 = vadd.f32 %v2344_v45, %v3477_v35  ;;  %v1274_v20 = vpop.f32.mrb[23].mxu1 }
 0x215   :  { %v2702_v37 = vpop.eup %2701  ;;  %v1840_v59 = vmul.f32 %v2916_v9, %v2700_v5  ;;  %2721 = vrcp.f32 %v1651_v11  ;;  %v2131_v52 = vmul.f32 -1.442695, %v1272_v63  ;;  %v1275_v15 = vadd.f32 %v3477_v35, %v1274_v20 }
 0x216   :  { %v2704_v51 = vpop.eup %2703  ;;  %v1838_v10 = vmul.f32 %v2917_v22, %v2702_v37  ;;  %2723 = vpow2.f32 %v2133_v18  ;;  %v2134_v24 = vmul.f32 -1.442695, %v1283_v23 }
 0x217   :  { %v2706_v53 = vpop.eup %2705  ;;  %1904 = vst.msk [vmem:[#allocation5 + $0x50] sm:$0xff] %vm155_vm0, %v1840_v59  ;;  %v1841_v12 = vmul.f32 %v2918_v0, %v2704_v51  ;;  %2725 = vpow2.f32 %v2131_v52  ;;  %v2132_v27 = vmul.f32 -1.442695, %v1275_v15  ;;  %v2924_v59 = vld [vmem:[#allocation2 + $0x90] sm:$0xff] }
 0x218   :  { %v2708_v30 = vpop.eup %2707  ;;  %1902 = vst.msk [vmem:[#allocation5 + $0x40] sm:$0xff] %vm155_vm0, %v1838_v10  ;;  %v1839_v32 = vmul.f32 %v2919_v31, %v2706_v53  ;;  %2727 = vpow2.f32 %v2134_v24  ;;  %v2925_v10 = vld [vmem:[#allocation2 + $0x80] sm:$0xff] }
 0x219   :  { %v2710_v54 = vpop.eup %2709  ;;  %1905 = vst.msk [vmem:[#allocation5 + $0x58] sm:$0xff] %vm155_vm0, %v1841_v12  ;;  %v1656_v60 = vadd.f32 1.0, %v2708_v30  ;;  %2729 = vpow2.f32 %v2132_v27  ;;  %v2926_v12 = vld [vmem:[#allocation2 + $0x98] sm:$0xff] }
 0x21a   :  { %v2712_v33 = vpop.eup %2711  ;;  %1903 = vst.msk [vmem:[#allocation5 + $0x48] sm:$0xff] %vm155_vm0, %v1839_v32  ;;  %v1654_v6 = vadd.f32 1.0, %v2710_v54  ;;  %v2347_v38 = vpop.f32.mrb[24].mxu1  ;;  %v2927_v32 = vld [vmem:[#allocation2 + $0x88] sm:$0xff] }
 0x21b   :  { %v2714_v19 = vpop.eup %2713  ;;  %2731 = vrcp.f32 %v1656_v60  ;;  %v1657_v4 = vadd.f32 1.0, %v2712_v33  ;;  %v1296_v39 = vadd.f32 %v2347_v38, %v3477_v35  ;;  %v1287_v29 = vpop.f32.mrb[25].mxu1 }
 0x21c   :  { %v2716_v43 = vpop.eup %2715  ;;  %2733 = vrcp.f32 %v1654_v6  ;;  %v1655_v3 = vadd.f32 1.0, %v2714_v19  ;;  %v1288_v26 = vadd.f32 %v3477_v35, %v1287_v29  ;;  %v2348_v14 = vpop.f32.mrb[26].mxu1 }
 0x21d   :  { %v2718_v1 = vpop.eup %2717  ;;  %v1844_v17 = vmul.f32 %v2920_v21, %v2716_v43  ;;  %2735 = vrcp.f32 %v1657_v4  ;;  %v2137_v28 = vmul.f32 -1.442695, %v1296_v39  ;;  %v1299_v36 = vadd.f32 %v2348_v14, %v3477_v35  ;;  %v1290_v49 = vpop.f32.mrb[27].mxu1 }
 0x21e   :  { %v2720_v50 = vpop.eup %2719  ;;  %v1842_v58 = vmul.f32 %v2921_v55, %v2718_v1  ;;  %2737 = vrcp.f32 %v1655_v3  ;;  %v2135_v25 = vmul.f32 -1.442695, %v1288_v26  ;;  %v1291_v47 = vadd.f32 %v3477_v35, %v1290_v49 }
 0x21f   :  { %v2722_v62 = vpop.eup %2721  ;;  %1908 = vst.msk [vmem:[#allocation5 + $0x70] sm:$0xff] %vm155_vm0, %v1844_v17  ;;  %v1845_v42 = vmul.f32 %v2922_v40, %v2720_v50  ;;  %2739 = vpow2.f32 %v2137_v28  ;;  %v2138_v34 = vmul.f32 -1.442695, %v1299_v36  ;;  %v2928_v17 = vld [vmem:[#allocation2 + $0xb0] sm:$0xff] }
 0x220   :  { %v2724_v13 = vpop.eup %2723  ;;  %1906 = vst.msk [vmem:[#allocation5 + $0x60] sm:$0xff] %vm155_vm0, %v1842_v58  ;;  %v1843_v57 = vmul.f32 %v2923_v46, %v2722_v62  ;;  %2741 = vpow2.f32 %v2135_v25  ;;  %v2136_v48 = vmul.f32 -1.442695, %v1291_v47  ;;  %v2929_v58 = vld [vmem:[#allocation2 + $0xa0] sm:$0xff] }
 0x221   :  { %v2726_v41 = vpop.eup %2725  ;;  %1909 = vst.msk [vmem:[#allocation5 + $0x78] sm:$0xff] %vm155_vm0, %v1845_v42  ;;  %v1660_v2 = vadd.f32 1.0, %v2724_v13  ;;  %2743 = vpow2.f32 %v2138_v34  ;;  %v2930_v42 = vld [vmem:[#allocation2 + $0xb8] sm:$0xff] }
 0x222   :  { %v2728_v44 = vpop.eup %2727  ;;  %1907 = vst.msk [vmem:[#allocation5 + $0x68] sm:$0xff] %vm155_vm0, %v1843_v57  ;;  %v1658_v16 = vadd.f32 1.0, %v2726_v41  ;;  %2745 = vpow2.f32 %v2136_v48  ;;  %v2351_v7 = vpop.f32.mrb[28].mxu1  ;;  %v2931_v57 = vld [vmem:[#allocation2 + $0xa8] sm:$0xff] }
 0x223   :  { %v2730_v8 = vpop.eup %2729  ;;  %2747 = vrcp.f32 %v1660_v2  ;;  %v1661_v61 = vadd.f32 1.0, %v2728_v44  ;;  %v1312_v56 = vadd.f32 %v2351_v7, %v3477_v35  ;;  %v1303_v11 = vpop.f32.mrb[29].mxu1 }
 0x224   :  { %2749 = vrcp.f32 %v1658_v16  ;;  %v1659_v63 = vadd.f32 1.0, %v2730_v8  ;;  %v1304_v45 = vadd.f32 %v3477_v35, %v1303_v11  ;;  %v2352_v5 = vpop.f32.mrb[30].mxu1 }
 0x225   :  { %v2732_v18 = vpop.eup %2731  ;;  %2751 = vrcp.f32 %v1661_v61  ;;  %v2141_v23 = vmul.f32 -1.442695, %v1312_v56  ;;  %v1315_v20 = vadd.f32 %v2352_v5, %v3477_v35  ;;  %v1306_v37 = vpop.f32.mrb[31].mxu1 }
 0x226   :  { %v2734_v9 = vpop.eup %2733  ;;  %v1848_v52 = vmul.f32 %v2924_v59, %v2732_v18  ;;  %2753 = vrcp.f32 %v1659_v63  ;;  %v2139_v15 = vmul.f32 -1.442695, %v1304_v45  ;;  %v1307_v51 = vadd.f32 %v3477_v35, %v1306_v37 }
 0x227   :  { %v2736_v22 = vpop.eup %2735  ;;  %v1846_v24 = vmul.f32 %v2925_v10, %v2734_v9  ;;  %2755 = vpow2.f32 %v2141_v23  ;;  %v2142_v53 = vmul.f32 -1.442695, %v1315_v20 }
 0x228   :  { %v2738_v0 = vpop.eup %2737  ;;  %1912 = vst.msk [vmem:[#allocation5 + $0x90] sm:$0xff] %vm155_vm0, %v1848_v52  ;;  %v1849_v27 = vmul.f32 %v2926_v12, %v2736_v22  ;;  %2757 = vpow2.f32 %v2139_v15  ;;  %v2140_v30 = vmul.f32 -1.442695, %v1307_v51  ;;  %v2932_v52 = vld [vmem:[#allocation2 + $0xd0] sm:$0xff] }
 0x229   :  { %v2740_v31 = vpop.eup %2739  ;;  %1910 = vst.msk [vmem:[#allocation5 + $0x80] sm:$0xff] %vm155_vm0, %v1846_v24  ;;  %v1847_v54 = vmul.f32 %v2927_v32, %v2738_v0  ;;  %2759 = vpow2.f32 %v2142_v53  ;;  %v2933_v24 = vld [vmem:[#allocation2 + $0xc0] sm:$0xff] }
 0x22a   :  { %v2742_v60 = vpop.eup %2741  ;;  %1913 = vst.msk [vmem:[#allocation5 + $0x98] sm:$0xff] %vm155_vm0, %v1849_v27  ;;  %v1664_v33 = vadd.f32 1.0, %v2740_v31  ;;  %2761 = vpow2.f32 %v2140_v30  ;;  %v2934_v27 = vld [vmem:[#allocation2 + $0xd8] sm:$0xff] }
 0x22b   :  { %v2744_v6 = vpop.eup %2743  ;;  %1911 = vst.msk [vmem:[#allocation5 + $0x88] sm:$0xff] %vm155_vm0, %v1847_v54  ;;  %v1662_v38 = vadd.f32 1.0, %v2742_v60  ;;  %v2355_v19 = vpop.f32.mrb[32].mxu1  ;;  %v2935_v54 = vld [vmem:[#allocation2 + $0xc8] sm:$0xff] }
 0x22c   :  { %v2746_v4 = vpop.eup %2745  ;;  %2763 = vrcp.f32 %v1664_v33  ;;  %v1665_v39 = vadd.f32 1.0, %v2744_v6  ;;  %v1328_v29 = vadd.f32 %v2355_v19, %v3477_v35  ;;  %v1319_v43 = vpop.f32.mrb[33].mxu1 }
 0x22d   :  { %v2748_v3 = vpop.eup %2747  ;;  %2765 = vrcp.f32 %v1662_v38  ;;  %v1663_v26 = vadd.f32 1.0, %v2746_v4  ;;  %v1320_v14 = vadd.f32 %v3477_v35, %v1319_v43  ;;  %v2356_v1 = vpop.f32.mrb[34].mxu1 }
 0x22e   :  { %v2750_v21 = vpop.eup %2749  ;;  %v1852_v28 = vmul.f32 %v2928_v17, %v2748_v3  ;;  %2767 = vrcp.f32 %v1665_v39  ;;  %v2145_v36 = vmul.f32 -1.442695, %v1328_v29  ;;  %v1331_v49 = vadd.f32 %v2356_v1, %v3477_v35  ;;  %v1322_v50 = vpop.f32.mrb[35].mxu1 }
 0x22f   :  { %v2752_v55 = vpop.eup %2751  ;;  %v1850_v25 = vmul.f32 %v2929_v58, %v2750_v21  ;;  %2769 = vrcp.f32 %v1663_v26  ;;  %v2143_v47 = vmul.f32 -1.442695, %v1320_v14  ;;  %v1323_v62 = vadd.f32 %v3477_v35, %v1322_v50  ;;  %v2936_v50 = vld [vmem:[#allocation2 + $0xf0] sm:$0xff] }
 0x230   :  { %v2754_v40 = vpop.eup %2753  ;;  %1916 = vst.msk [vmem:[#allocation5 + $0xb0] sm:$0xff] %vm155_vm0, %v1852_v28  ;;  %v1853_v34 = vmul.f32 %v2930_v42, %v2752_v55  ;;  %2771 = vpow2.f32 %v2145_v36  ;;  %v2146_v13 = vmul.f32 -1.442695, %v1331_v49 }
 0x231   :  { %v2756_v46 = vpop.eup %2755  ;;  %1914 = vst.msk [vmem:[#allocation5 + $0xa0] sm:$0xff] %vm155_vm0, %v1850_v25  ;;  %v1851_v48 = vmul.f32 %v2931_v57, %v2754_v40  ;;  %2773 = vpow2.f32 %v2143_v47  ;;  %v2144_v41 = vmul.f32 -1.442695, %v1323_v62  ;;  %v2937_v62 = vld [vmem:[#allocation2 + $0xe0] sm:$0xff] }
 0x232   :  { %v2758_v2 = vpop.eup %2757  ;;  %1917 = vst.msk [vmem:[#allocation5 + $0xb8] sm:$0xff] %vm155_vm0, %v1853_v34  ;;  %v1668_v44 = vadd.f32 1.0, %v2756_v46  ;;  %2775 = vpow2.f32 %v2146_v13  ;;  %v2938_v13 = vld [vmem:[#allocation2 + $0xf8] sm:$0xff] }
 0x233   :  { %v2760_v16 = vpop.eup %2759  ;;  %1915 = vst.msk [vmem:[#allocation5 + $0xa8] sm:$0xff] %vm155_vm0, %v1851_v48  ;;  %v1666_v7 = vadd.f32 1.0, %v2758_v2  ;;  %2777 = vpow2.f32 %v2144_v41  ;;  %v2359_v8 = vpop.f32.mrb[36].mxu1  ;;  %v2939_v41 = vld [vmem:[#allocation2 + $0xe8] sm:$0xff] }
 0x234   :  { %v2762_v61 = vpop.eup %2761  ;;  %2779 = vrcp.f32 %v1668_v44  ;;  %v1669_v56 = vadd.f32 1.0, %v2760_v16  ;;  %v1344_v11 = vadd.f32 %v2359_v8, %v3477_v35  ;;  %v1335_v63 = vpop.f32.mrb[37].mxu1 }
 0x235   :  { %2781 = vrcp.f32 %v1666_v7  ;;  %v1667_v45 = vadd.f32 1.0, %v2762_v61  ;;  %v1336_v5 = vadd.f32 %v3477_v35, %v1335_v63  ;;  %v2360_v18 = vpop.f32.mrb[38].mxu1 }
 0x236   :  { %v2764_v23 = vpop.eup %2763  ;;  %2783 = vrcp.f32 %v1669_v56  ;;  %v2149_v20 = vmul.f32 -1.442695, %v1344_v11  ;;  %v1347_v37 = vadd.f32 %v2360_v18, %v3477_v35  ;;  %v1338_v9 = vpop.f32.mrb[39].mxu1 }
 0x237   :  { %v2766_v59 = vpop.eup %2765  ;;  %v1856_v15 = vmul.f32 %v2932_v52, %v2764_v23  ;;  %2785 = vrcp.f32 %v1667_v45  ;;  %v2147_v51 = vmul.f32 -1.442695, %v1336_v5  ;;  %v1339_v22 = vadd.f32 %v3477_v35, %v1338_v9 }
 0x238   :  { %v2768_v10 = vpop.eup %2767  ;;  %v1854_v53 = vmul.f32 %v2933_v24, %v2766_v59  ;;  %2787 = vpow2.f32 %v2149_v20  ;;  %v2150_v0 = vmul.f32 -1.442695, %v1347_v37 }
 0x239   :  { %v2770_v12 = vpop.eup %2769  ;;  %1920 = vst.msk [vmem:[#allocation5 + $0xd0] sm:$0xff] %vm155_vm0, %v1856_v15  ;;  %v1857_v30 = vmul.f32 %v2934_v27, %v2768_v10  ;;  %2789 = vpow2.f32 %v2147_v51  ;;  %v2148_v31 = vmul.f32 -1.442695, %v1339_v22  ;;  %v2940_v15 = vld [vmem:[#allocation2 + $0x110] sm:$0xff] }
 0x23a   :  { %v2772_v32 = vpop.eup %2771  ;;  %1918 = vst.msk [vmem:[#allocation5 + $0xc0] sm:$0xff] %vm155_vm0, %v1854_v53  ;;  %v1855_v60 = vmul.f32 %v2935_v54, %v2770_v12  ;;  %2791 = vpow2.f32 %v2150_v0  ;;  %v2941_v53 = vld [vmem:[#allocation2 + $0x100] sm:$0xff] }
 0x23b   :  { %v2774_v33 = vpop.eup %2773  ;;  %1921 = vst.msk [vmem:[#allocation5 + $0xd8] sm:$0xff] %vm155_vm0, %v1857_v30  ;;  %v1672_v6 = vadd.f32 1.0, %v2772_v32  ;;  %2793 = vpow2.f32 %v2148_v31  ;;  %v2363_v38 = vpop.f32.mrb[40].mxu1  ;;  %v2942_v30 = vld [vmem:[#allocation2 + $0x118] sm:$0xff] }
 0x23c   :  { %v2776_v19 = vpop.eup %2775  ;;  %1919 = vst.msk [vmem:[#allocation5 + $0xc8] sm:$0xff] %vm155_vm0, %v1855_v60  ;;  %v1670_v4 = vadd.f32 1.0, %v2774_v33  ;;  %v1360_v39 = vadd.f32 %v2363_v38, %v3477_v35  ;;  %v1351_v29 = vpop.f32.mrb[41].mxu1  ;;  %v2943_v60 = vld [vmem:[#allocation2 + $0x108] sm:$0xff] }
 0x23d   :  { %v2778_v43 = vpop.eup %2777  ;;  %2795 = vrcp.f32 %v1672_v6  ;;  %v1673_v3 = vadd.f32 1.0, %v2776_v19  ;;  %v1352_v26 = vadd.f32 %v3477_v35, %v1351_v29  ;;  %v2364_v14 = vpop.f32.mrb[42].mxu1 }
 0x23e   :  { %v2780_v1 = vpop.eup %2779  ;;  %2797 = vrcp.f32 %v1670_v4  ;;  %v1671_v21 = vadd.f32 1.0, %v2778_v43  ;;  %v2153_v17 = vmul.f32 -1.442695, %v1360_v39  ;;  %v1363_v28 = vadd.f32 %v2364_v14, %v3477_v35  ;;  %v1354_v36 = vpop.f32.mrb[43].mxu1 }
 0x23f   :  { %v2782_v49 = vpop.eup %2781  ;;  %v1860_v55 = vmul.f32 %v2936_v50, %v2780_v1  ;;  %2799 = vrcp.f32 %v1673_v3  ;;  %v2151_v58 = vmul.f32 -1.442695, %v1352_v26  ;;  %v1355_v25 = vadd.f32 %v3477_v35, %v1354_v36 }
 0x240   :  { %v2784_v47 = vpop.eup %2783  ;;  %v1858_v40 = vmul.f32 %v2937_v62, %v2782_v49  ;;  %2801 = vrcp.f32 %v1671_v21  ;;  %v2154_v42 = vmul.f32 -1.442695, %v1363_v28 }
 0x241   :  { %v2786_v34 = vpop.eup %2785  ;;  %1924 = vst.msk [vmem:[#allocation5 + $0xf0] sm:$0xff] %vm155_vm0, %v1860_v55  ;;  %v1861_v46 = vmul.f32 %v2938_v13, %v2784_v47  ;;  %2803 = vpow2.f32 %v2153_v17  ;;  %v2152_v57 = vmul.f32 -1.442695, %v1355_v25  ;;  %v2944_v55 = vld [vmem:[#allocation2 + $0x130] sm:$0xff] }
 0x242   :  { %v2788_v48 = vpop.eup %2787  ;;  %1922 = vst.msk [vmem:[#allocation5 + $0xe0] sm:$0xff] %vm155_vm0, %v1858_v40  ;;  %v1859_v2 = vmul.f32 %v2939_v41, %v2786_v34  ;;  %2805 = vpow2.f32 %v2151_v58  ;;  %v2945_v40 = vld [vmem:[#allocation2 + $0x120] sm:$0xff] }
 0x243   :  { %v2790_v44 = vpop.eup %2789  ;;  %1925 = vst.msk [vmem:[#allocation5 + $0xf8] sm:$0xff] %vm155_vm0, %v1861_v46  ;;  %v1676_v16 = vadd.f32 1.0, %v2788_v48  ;;  %2807 = vpow2.f32 %v2154_v42  ;;  %v2946_v46 = vld [vmem:[#allocation2 + $0x138] sm:$0xff] }
 0x244   :  { %v2792_v7 = vpop.eup %2791  ;;  %1923 = vst.msk [vmem:[#allocation5 + $0xe8] sm:$0xff] %vm155_vm0, %v1859_v2  ;;  %v1674_v8 = vadd.f32 1.0, %v2790_v44  ;;  %2809 = vpow2.f32 %v2152_v57  ;;  %v2367_v61 = vpop.f32.mrb[44].mxu1  ;;  %v2947_v2 = vld [vmem:[#allocation2 + $0x128] sm:$0xff] }
 0x245   :  { %v2794_v56 = vpop.eup %2793  ;;  %2811 = vrcp.f32 %v1676_v16  ;;  %v1677_v11 = vadd.f32 1.0, %v2792_v7  ;;  %v1376_v63 = vadd.f32 %v2367_v61, %v3477_v35  ;;  %v1367_v45 = vpop.f32.mrb[45].mxu1 }
 0x246   :  { %2813 = vrcp.f32 %v1674_v8  ;;  %v1675_v5 = vadd.f32 1.0, %v2794_v56  ;;  %v1368_v18 = vadd.f32 %v3477_v35, %v1367_v45  ;;  %v2368_v23 = vpop.f32.mrb[46].mxu1 }
 0x247   :  { %v2796_v20 = vpop.eup %2795  ;;  %2815 = vrcp.f32 %v1677_v11  ;;  %v2157_v37 = vmul.f32 -1.442695, %v1376_v63  ;;  %v1379_v9 = vadd.f32 %v2368_v23, %v3477_v35  ;;  %v1370_v59 = vpop.f32.mrb[47].mxu1 }
 0x248   :  { %v2798_v52 = vpop.eup %2797  ;;  %v1864_v51 = vmul.f32 %v2940_v15, %v2796_v20  ;;  %2817 = vrcp.f32 %v1675_v5  ;;  %v2155_v22 = vmul.f32 -1.442695, %v1368_v18  ;;  %v1371_v10 = vadd.f32 %v3477_v35, %v1370_v59 }
 0x249   :  { %v2800_v24 = vpop.eup %2799  ;;  %v1862_v0 = vmul.f32 %v2941_v53, %v2798_v52  ;;  %2819 = vpow2.f32 %v2157_v37  ;;  %v2158_v12 = vmul.f32 -1.442695, %v1379_v9 }
 0x24a   :  { %v2802_v27 = vpop.eup %2801  ;;  %1928 = vst.msk [vmem:[#allocation5 + $0x110] sm:$0xff] %vm155_vm0, %v1864_v51  ;;  %v1865_v31 = vmul.f32 %v2942_v30, %v2800_v24  ;;  %2821 = vpow2.f32 %v2155_v22  ;;  %v2156_v32 = vmul.f32 -1.442695, %v1371_v10  ;;  %v2948_v10 = vld [vmem:[#allocation2 + $0x150] sm:$0xff] }
 0x24b   :  { %v2804_v54 = vpop.eup %2803  ;;  %1926 = vst.msk [vmem:[#allocation5 + $0x100] sm:$0xff] %vm155_vm0, %v1862_v0  ;;  %v1863_v33 = vmul.f32 %v2943_v60, %v2802_v27  ;;  %2823 = vpow2.f32 %v2158_v12  ;;  %v2949_v12 = vld [vmem:[#allocation2 + $0x140] sm:$0xff] }
 0x24c   :  { %v2806_v6 = vpop.eup %2805  ;;  %1929 = vst.msk [vmem:[#allocation5 + $0x118] sm:$0xff] %vm155_vm0, %v1865_v31  ;;  %v1680_v38 = vadd.f32 1.0, %v2804_v54  ;;  %2825 = vpow2.f32 %v2156_v32  ;;  %v2371_v19 = vpop.f32.mrb[48].mxu1  ;;  %v2950_v32 = vld [vmem:[#allocation2 + $0x158] sm:$0xff] }
 0x24d   :  { %v2808_v4 = vpop.eup %2807  ;;  %1927 = vst.msk [vmem:[#allocation5 + $0x108] sm:$0xff] %vm155_vm0, %v1863_v33  ;;  %v1678_v39 = vadd.f32 1.0, %v2806_v6  ;;  %v1392_v29 = vadd.f32 %v2371_v19, %v3477_v35  ;;  %v1383_v43 = vpop.f32.mrb[49].mxu1  ;;  %v2951_v33 = vld [vmem:[#allocation2 + $0x148] sm:$0xff] }
 0x24e   :  { %v2810_v3 = vpop.eup %2809  ;;  %2827 = vrcp.f32 %v1680_v38  ;;  %v1681_v26 = vadd.f32 1.0, %v2808_v4  ;;  %v1384_v14 = vadd.f32 %v3477_v35, %v1383_v43  ;;  %v2372_v1 = vpop.f32.mrb[50].mxu1 }
 0x24f   :  { %v2812_v21 = vpop.eup %2811  ;;  %2829 = vrcp.f32 %v1678_v39  ;;  %v1679_v17 = vadd.f32 1.0, %v2810_v3  ;;  %v2161_v28 = vmul.f32 -1.442695, %v1392_v29  ;;  %v1395_v36 = vadd.f32 %v2372_v1, %v3477_v35  ;;  %v1386_v49 = vpop.f32.mrb[51].mxu1  ;;  %v2952_v1 = vld [vmem:[%s3622_s4] ss:$0 sm:$0xff] }
 0x250   :  { %v2814_v50 = vpop.eup %2813  ;;  %v1868_v58 = vmul.f32 %v2944_v55, %v2812_v21  ;;  %2831 = vrcp.f32 %v1681_v26  ;;  %v2159_v25 = vmul.f32 -1.442695, %v1384_v14  ;;  %v1387_v47 = vadd.f32 %v3477_v35, %v1386_v49  ;;  %s3024_s4 = smov [#allocation5]  }
 0x251   :  { %v2816_v62 = vpop.eup %2815  ;;  %v1866_v42 = vmul.f32 %v2945_v40, %v2814_v50  ;;  %2833 = vrcp.f32 %v1679_v17  ;;  %v2162_v34 = vmul.f32 -1.442695, %v1395_v36  ;;  %s1963_s23 = sshll.u32 %s3024_s4, 4  ;;  %s1964_s23 = int_to_ptr.vmem [resolvable:$true] %s1963_s23 }
 0x252   :  { %v2818_v13 = vpop.eup %2817  ;;  %1932 = vst.msk [vmem:[#allocation5 + $0x130] sm:$0xff] %vm155_vm0, %v1868_v58  ;;  %v1869_v57 = vmul.f32 %v2946_v46, %v2816_v62  ;;  %2835 = vpow2.f32 %v2161_v28  ;;  %v2160_v48 = vmul.f32 -1.442695, %v1387_v47  ;;  %s2995_s24 = scalar_lea.vmem %s1964_s23, 8192  ;;  %p3000_p9 = scmp.lt.s32.totalorder %s1964_s23, %s1964_s23 }
 0x253   :  { %v2820_v41 = vpop.eup %2819  ;;  %1930 = vst.msk [vmem:[#allocation5 + $0x120] sm:$0xff] %vm155_vm0, %v1866_v42  ;;  %v1867_v44 = vmul.f32 %v2947_v2, %v2818_v13  ;;  %2837 = vpow2.f32 %v2159_v25  ;;  %v2953_v25 = vld [vmem:[#allocation2 + $0x170] sm:$0xff]  ;;  %v2954_v42 = vld [vmem:[#allocation2 + $0x160] sm:$0xff]  ;;  %p2996_p8 = scmp.ne.s32.totalorder %s1964_s23, %s2995_s24  ;;  %p3001_p10 = scmp.lt.s32.totalorder %s2995_s24, %s2995_s24 }
 0x254   :  { %v2822_v16 = vpop.eup %2821  ;;  %1933 = vst.msk [vmem:[#allocation5 + $0x138] sm:$0xff] %vm155_vm0, %v1869_v57  ;;  %v1684_v7 = vadd.f32 1.0, %v2820_v41  ;;  %2839 = vpow2.f32 %v2162_v34  ;;  %v2375_v8 = vpop.f32.mrb[52].mxu1  ;;  %v2955_v57 = vld [vmem:[#allocation2 + $0x178] sm:$0xff] }
 0x255   :  { %v2824_v61 = vpop.eup %2823  ;;  %1931 = vst.msk [vmem:[#allocation5 + $0x128] sm:$0xff] %vm155_vm0, %v1867_v44  ;;  %v1682_v56 = vadd.f32 1.0, %v2822_v16  ;;  %2841 = vpow2.f32 %v2160_v48  ;;  %v1408_v11 = vadd.f32 %v2375_v8, %v3477_v35  ;;  %v1399_v63 = vpop.f32.mrb[53].mxu1  ;;  %v2956_v44 = vld [vmem:[#allocation2 + $0x168] sm:$0xff]  ;;  %p3002_p11 = por %p3001_p10, %p3000_p9 }
 0x256   :  { %v2826_v45 = vpop.eup %2825  ;;  %2843 = vrcp.f32 %v1684_v7  ;;  %v1685_v5 = vadd.f32 1.0, %v2824_v61  ;;  %v1400_v18 = vadd.f32 %v3477_v35, %v1399_v63  ;;  %v2376_v23 = vpop.f32.mrb[54].mxu1 }
 0x257   :  { %2845 = vrcp.f32 %v1682_v56  ;;  %v1683_v20 = vadd.f32 1.0, %v2826_v45  ;;  %v2165_v37 = vmul.f32 -1.442695, %v1408_v11  ;;  %v1411_v9 = vadd.f32 %v2376_v23, %v3477_v35  ;;  %v1402_v59 = vpop.f32.mrb[55].mxu1  ;;  %p3003_p12 = pnand %p3002_p11, %p2996_p8 }
 0x258   :  { %v2828_v52 = vpop.eup %2827  ;;  %2847 = vrcp.f32 %v1685_v5  ;;  %v2163_v15 = vmul.f32 -1.442695, %v1400_v18  ;;  %v1403_v51 = vadd.f32 %v3477_v35, %v1402_v59 }
 0x259   :  { %v2830_v22 = vpop.eup %2829  ;;  %v1872_v24 = vmul.f32 %v2948_v10, %v2828_v52  ;;  %2849 = vrcp.f32 %v1683_v20  ;;  %v2166_v53 = vmul.f32 -1.442695, %v1411_v9 }
 0x25a   :  { %v2832_v0 = vpop.eup %2831  ;;  %v1870_v27 = vmul.f32 %v2949_v12, %v2830_v22  ;;  %2851 = vpow2.f32 %v2165_v37  ;;  %v2164_v30 = vmul.f32 -1.442695, %v1403_v51 }
 0x25b   :  { %v2834_v31 = vpop.eup %2833  ;;  %1936 = vst.msk [vmem:[#allocation5 + $0x150] sm:$0xff] %vm155_vm0, %v1872_v24  ;;  %v1873_v54 = vmul.f32 %v2950_v32, %v2832_v0  ;;  %2853 = vpow2.f32 %v2163_v15  ;;  %v2957_v24 = vld [vmem:[#allocation2 + $0x190] sm:$0xff] }
 0x25c   :  { %v2836_v60 = vpop.eup %2835  ;;  %1934 = vst.msk [vmem:[#allocation5 + $0x140] sm:$0xff] %vm155_vm0, %v1870_v27  ;;  %v1871_v6 = vmul.f32 %v2951_v33, %v2834_v31  ;;  %2855 = vpow2.f32 %v2166_v53  ;;  %v2958_v27 = vld [vmem:[#allocation2 + $0x180] sm:$0xff] }
 0x25d   :  { %v2838_v38 = vpop.eup %2837  ;;  %1937 = vst.msk [vmem:[#allocation5 + $0x158] sm:$0xff] %vm155_vm0, %v1873_v54  ;;  %v1688_v19 = vadd.f32 1.0, %v2836_v60  ;;  %2857 = vpow2.f32 %v2164_v30  ;;  %v2379_v4 = vpop.f32.mrb[56].mxu1  ;;  %v2959_v54 = vld [vmem:[#allocation2 + $0x198] sm:$0xff] }
 0x25e   :  { %v2840_v39 = vpop.eup %2839  ;;  %1935 = vst.msk [vmem:[#allocation5 + $0x148] sm:$0xff] %vm155_vm0, %v1871_v6  ;;  %v1686_v29 = vadd.f32 1.0, %v2838_v38  ;;  %v1424_v43 = vadd.f32 %v2379_v4, %v3477_v35  ;;  %v1415_v3 = vpop.f32.mrb[57].mxu1  ;;  %v2960_v6 = vld [vmem:[#allocation2 + $0x188] sm:$0xff] }
 0x25f   :  { %v2842_v26 = vpop.eup %2841  ;;  %2859 = vrcp.f32 %v1688_v19  ;;  %v1689_v14 = vadd.f32 1.0, %v2840_v39  ;;  %v1416_v21 = vadd.f32 %v2952_v1, %v1415_v3  ;;  %v2380_v17 = vpop.f32.mrb[58].mxu1 }
 0x260   :  { %v2844_v28 = vpop.eup %2843  ;;  %2861 = vrcp.f32 %v1686_v29  ;;  %v1687_v36 = vadd.f32 1.0, %v2842_v26  ;;  %v2169_v49 = vmul.f32 -1.442695, %v1424_v43  ;;  %v1427_v50 = vadd.f32 %v2952_v1, %v2380_v17  ;;  %v1418_v55 = vpop.f32.mrb[59].mxu1 }
 0x261   :  { %v2846_v58 = vpop.eup %2845  ;;  %v1876_v47 = vmul.f32 %v2953_v25, %v2844_v28  ;;  %2863 = vrcp.f32 %v1689_v14  ;;  %v2167_v35 = vmul.f32 -1.442695, %v1416_v21  ;;  %v1419_v62 = vadd.f32 %v2952_v1, %v1418_v55  ;;  %v2961_v21 = vld [vmem:[#allocation2 + $0x1b0] sm:$0xff]  ;;  %v2963_v55 = vld [vmem:[#allocation2 + $0x1b8] sm:$0xff] }
 0x262   :  { %v2848_v40 = vpop.eup %2847  ;;  %v1874_v34 = vmul.f32 %v2954_v42, %v2846_v58  ;;  %2865 = vrcp.f32 %v1687_v36  ;;  %v2170_v13 = vmul.f32 -1.442695, %v1427_v50  ;;  %v2962_v36 = vld [vmem:[#allocation2 + $0x1a0] sm:$0xff] }
 0x263   :  { %v2850_v46 = vpop.eup %2849  ;;  %1940 = vst.msk [vmem:[#allocation5 + $0x170] sm:$0xff] %vm155_vm0, %v1876_v47  ;;  %v1877_v48 = vmul.f32 %v2955_v57, %v2848_v40  ;;  %2867 = vpow2.f32 %v2169_v49  ;;  %v2168_v41 = vmul.f32 -1.442695, %v1419_v62  ;;  %v2964_v47 = vld [vmem:[#allocation2 + $0x1a8] sm:$0xff] }
 0x264   :  { %v2852_v2 = vpop.eup %2851  ;;  %1938 = vst.msk [vmem:[#allocation5 + $0x160] sm:$0xff] %vm155_vm0, %v1874_v34  ;;  %v1875_v16 = vmul.f32 %v2956_v44, %v2850_v46  ;;  %2869 = vpow2.f32 %v2167_v35 }
 0x265   :  { %v2854_v7 = vpop.eup %2853  ;;  %1941 = vst.msk [vmem:[#allocation5 + $0x178] sm:$0xff] %vm155_vm0, %v1877_v48  ;;  %v1692_v8 = vadd.f32 1.0, %v2852_v2  ;;  %2871 = vpow2.f32 %v2170_v13  ;;  %v2383_v61 = vpop.f32.mrb[60].mxu1  ;;  %v2965_v2 = vld [vmem:[#allocation2 + $0x1d0] sm:$0xff] }
 0x266   :  { %v2856_v56 = vpop.eup %2855  ;;  %1939 = vst.msk [vmem:[#allocation5 + $0x168] sm:$0xff] %vm155_vm0, %v1875_v16  ;;  %v1690_v11 = vadd.f32 1.0, %v2854_v7  ;;  %2873 = vpow2.f32 %v2168_v41  ;;  %v1440_v63 = vadd.f32 %v2952_v1, %v2383_v61  ;;  %v1431_v45 = vpop.f32.mrb[61].mxu1  ;;  %v2966_v7 = vld [vmem:[#allocation2 + $0x1c0] sm:$0xff] }
 0x267   :  { %v2858_v5 = vpop.eup %2857  ;;  %2875 = vrcp.f32 %v1692_v8  ;;  %v1693_v18 = vadd.f32 1.0, %v2856_v56  ;;  %v1432_v23 = vadd.f32 %v2952_v1, %v1431_v45  ;;  %v2384_v20 = vpop.f32.mrb[62].mxu1  ;;  %v2967_v56 = vld [vmem:[#allocation2 + $0x1d8] sm:$0xff] }
 0x268   :  { %2877 = vrcp.f32 %v1690_v11  ;;  %v1691_v37 = vadd.f32 1.0, %v2858_v5  ;;  %v2173_v9 = vmul.f32 -1.442695, %v1440_v63  ;;  %v1443_v59 = vadd.f32 %v2952_v1, %v2384_v20  ;;  %v1434_v52 = vpop.f32.mrb[63].mxu1  ;;  %v2968_v63 = vld [vmem:[#allocation2 + $0x1c8] sm:$0xff] }
 0x269   :  { %v2860_v15 = vpop.eup %2859  ;;  %2879 = vrcp.f32 %v1693_v18  ;;  %v2171_v51 = vmul.f32 -1.442695, %v1432_v23  ;;  %v1435_v22 = vadd.f32 %v2952_v1, %v1434_v52  ;;  %v2969_v23 = vld [vmem:[#allocation2 + $0x1f0] sm:$0xff] }
 0x26a   :  { %v2862_v10 = vpop.eup %2861  ;;  %v1880_v53 = vmul.f32 %v2957_v24, %v2860_v15  ;;  %2881 = vrcp.f32 %v1691_v37  ;;  %v2174_v0 = vmul.f32 -1.442695, %v1443_v59  ;;  %v2971_v15 = vld [vmem:[#allocation2 + $0x1f8] sm:$0xff] }
 0x26b   :  { %v2864_v12 = vpop.eup %2863  ;;  %v1878_v30 = vmul.f32 %v2958_v27, %v2862_v10  ;;  %2883 = vpow2.f32 %v2173_v9  ;;  %v2172_v31 = vmul.f32 -1.442695, %v1435_v22  ;;  %v2970_v9 = vld [vmem:[#allocation2 + $0x1e0] sm:$0xff]  ;;  %v2972_v22 = vld [vmem:[#allocation2 + $0x1e8] sm:$0xff] }
 0x26c   :  { %v2866_v32 = vpop.eup %2865  ;;  %1944 = vst.msk [vmem:[#allocation5 + $0x190] sm:$0xff] %vm155_vm0, %v1880_v53  ;;  %v1881_v60 = vmul.f32 %v2959_v54, %v2864_v12  ;;  %2885 = vpow2.f32 %v2171_v51 }
 0x26d   :  { %v2868_v33 = vpop.eup %2867  ;;  %1942 = vst.msk [vmem:[#allocation5 + $0x180] sm:$0xff] %vm155_vm0, %v1878_v30  ;;  %v1879_v38 = vmul.f32 %v2960_v6, %v2866_v32  ;;  %2887 = vpow2.f32 %v2174_v0 }
 0x26e   :  { %v2870_v19 = vpop.eup %2869  ;;  %1945 = vst.msk [vmem:[#allocation5 + $0x198] sm:$0xff] %vm155_vm0, %v1881_v60  ;;  %v1696_v4 = vadd.f32 1.0, %v2868_v33  ;;  %2889 = vpow2.f32 %v2172_v31 }
 0x26f   :  { %v2872_v39 = vpop.eup %2871  ;;  %1943 = vst.msk [vmem:[#allocation5 + $0x188] sm:$0xff] %vm155_vm0, %v1879_v38  ;;  %v1694_v29 = vadd.f32 1.0, %v2870_v19 }
 0x270   :  { %v2874_v43 = vpop.eup %2873  ;;  %2891 = vrcp.f32 %v1696_v4  ;;  %v1697_v3 = vadd.f32 1.0, %v2872_v39 }
 0x271   :  { %v2876_v26 = vpop.eup %2875  ;;  %2893 = vrcp.f32 %v1694_v29  ;;  %v1695_v14 = vadd.f32 1.0, %v2874_v43 }
 0x272   :  { %v2878_v1 = vpop.eup %2877  ;;  %v1884_v17 = vmul.f32 %v2961_v21, %v2876_v26  ;;  %2895 = vrcp.f32 %v1697_v3 }
 0x273   :  { %v2880_v28 = vpop.eup %2879  ;;  %v1882_v49 = vmul.f32 %v2962_v36, %v2878_v1  ;;  %2897 = vrcp.f32 %v1695_v14 }
 0x274   :  { %v2882_v50 = vpop.eup %2881  ;;  %1948 = vst.msk [vmem:[#allocation5 + $0x1b0] sm:$0xff] %vm155_vm0, %v1884_v17  ;;  %v1885_v58 = vmul.f32 %v2963_v55, %v2880_v28 }
 0x275   :  { %v2884_v25 = vpop.eup %2883  ;;  %1946 = vst.msk [vmem:[#allocation5 + $0x1a0] sm:$0xff] %vm155_vm0, %v1882_v49  ;;  %v1883_v35 = vmul.f32 %v2964_v47, %v2882_v50 }
 0x276   :  { %v2886_v62 = vpop.eup %2885  ;;  %1949 = vst.msk [vmem:[#allocation5 + $0x1b8] sm:$0xff] %vm155_vm0, %v1885_v58  ;;  %v1700_v40 = vadd.f32 1.0, %v2884_v25 }
 0x277   :  { %v2888_v42 = vpop.eup %2887  ;;  %1947 = vst.msk [vmem:[#allocation5 + $0x1a8] sm:$0xff] %vm155_vm0, %v1883_v35  ;;  %v1698_v34 = vadd.f32 1.0, %v2886_v62 }
 0x278   :  { %v2890_v13 = vpop.eup %2889  ;;  %2899 = vrcp.f32 %v1700_v40  ;;  %v1701_v46 = vadd.f32 1.0, %v2888_v42 }
 0x279   :  { %2901 = vrcp.f32 %v1698_v34  ;;  %v1699_v57 = vadd.f32 1.0, %v2890_v13 }
 0x27a   :  { %v2892_v48 = vpop.eup %2891  ;;  %2903 = vrcp.f32 %v1701_v46 }
 0x27b   :  { %v2894_v41 = vpop.eup %2893  ;;  %v1888_v44 = vmul.f32 %v2965_v2, %v2892_v48  ;;  %2905 = vrcp.f32 %v1699_v57 }
 0x27c   :  { %v2896_v16 = vpop.eup %2895  ;;  %v1886_v8 = vmul.f32 %v2966_v7, %v2894_v41 }
 0x27d   :  { %v2898_v61 = vpop.eup %2897  ;;  %1952 = vst.msk [vmem:[#allocation5 + $0x1d0] sm:$0xff] %vm155_vm0, %v1888_v44  ;;  %v1889_v11 = vmul.f32 %v2967_v56, %v2896_v16 }
 0x27e   :  { %1950 = vst.msk [vmem:[#allocation5 + $0x1c0] sm:$0xff] %vm155_vm0, %v1886_v8  ;;  %v1887_v45 = vmul.f32 %v2968_v63, %v2898_v61 }
 0x27f   :  { %1953 = vst.msk [vmem:[#allocation5 + $0x1d8] sm:$0xff] %vm155_vm0, %v1889_v11 }
 0x280   :  { %1951 = vst.msk [vmem:[#allocation5 + $0x1c8] sm:$0xff] %vm155_vm0, %v1887_v45 }
 0x282   :  { %v2900_v5 = vpop.eup %2899 }
 0x283   :  { %v2902_v18 = vpop.eup %2901  ;;  %v1892_v20 = vmul.f32 %v2969_v23, %v2900_v5 }
 0x284   :  { %v2904_v37 = vpop.eup %2903  ;;  %v1890_v59 = vmul.f32 %v2970_v9, %v2902_v18 }
 0x285   :  { %v2906_v52 = vpop.eup %2905  ;;  %1956 = vst.msk [vmem:[#allocation5 + $0x1f0] sm:$0xff] %vm155_vm0, %v1892_v20  ;;  %v1893_v51 = vmul.f32 %v2971_v15, %v2904_v37 }
 0x286   :  { %1954 = vst.msk [vmem:[#allocation5 + $0x1e0] sm:$0xff] %vm155_vm0, %v1890_v59  ;;  %v1891_v10 = vmul.f32 %v2972_v22, %v2906_v52 }
 0x287   :  { %1957 = vst.msk [vmem:[#allocation5 + $0x1f8] sm:$0xff] %vm155_vm0, %v1893_v51 }
 0x288   :  { %1955 = vst.msk [vmem:[#allocation5 + $0x1e8] sm:$0xff] %vm155_vm0, %v1891_v10 }
 0x289   :  { %3006 = shalt.err (!%p3003_p12)
}
 0x28a   :  { %s3007_s27 = scalar_lea.hbm %s3623_s5, 8192 }
 0x28b   :  { %p3008_p13 = scmp.ne.s32.totalorder %s3623_s5, %s3007_s27  ;;  %p3011_p0 = scmp.lt.u32.totalorder %s3007_s27, %s3623_s5 }
 0x28d   :  { %p3013_p1 = pnand %p3011_p0, %p3008_p13 }
 0x28f   :  { %3016 = shalt.err (!%p3013_p1)
}
 0x290   :  { %1969 = dma.vmem_to_hbm [thread:$0]  %s1964_s23, 8192, %s3623_s5, [#allocation4], %s3022_s28, %s3022_s28, %s3023_s29  }
 0x291   :  { %3019 = dma.done.wait [#allocation4], 8192  }
 0x292   :  { %3020 = vsyncadd [#allocation4], 4294959104 }
 0x293   :  { %1973 = vsyncpa [#allocation3], 1 }
 0x294   :  { %1974 = vsyncpa [#allocation4], 1 }

</bundles_post_ra>
